<compile_context>
chip_gen: v7x
topology: tpu7x:2x2x1
jax: 0.10.0
libtpu: 0.0.40
codegen_flags: <defaults>
</compile_context>

<pallas_src>
import functools

import numpy as np
import jax
import jax.numpy as jnp
from jax import lax
from jax.experimental import pallas as pl
from jax.experimental.pallas import tpu as pltpu


# fp32 contract precision on the MXU: the 0/1 selector / permutation matmuls
# are then exact and the real reductions keep f32 accuracy.  The MXU is
# otherwise idle (the kernel is HBM-bound), so the extra passes are hidden.
_DOT = functools.partial(jnp.dot, preferred_element_type=jnp.float32,
                         precision=lax.Precision.HIGHEST)


def _detnet_kernel(t1_ref, t3_ref, texp_ref, rsum_ref, rexp_ref, tsum_ref,
                   iexp_ref, isum_ref, wperm_ref, h_ref, y_ref, sh_ref,
                   zt_ref, w_ref):
    hf = h_ref[...]          # (BT, NR*NT)  lane-dense flattened H, k = r*NT+t
    y = y_ref[...]           # (BT, NR)
    sh = sh_ref[...]         # (BT, NT)
    t1 = t1_ref[...]         # (1, NT*NT) shared  or  (BT, NT*NT) per-batch
    t3 = t3_ref[...]         # (1, NT)

    # shatt broadcast to the 128 flattened lanes: sh_exp[b, r*NT+t] = sh[b, t]
    sh_exp = _DOT(sh, texp_ref[...])                     # (BT, 128)
    # zt2 = y - H @ shatt  (sum over t within each r-group of NT lanes)
    zt2 = y - _DOT(hf * sh_exp, rsum_ref[...])           # (BT, NR)
    # zt2 broadcast back onto the 128 lanes: zt2e[b, r*NT+t] = zt2[b, r]
    zt2e = _DOT(zt2, rexp_ref[...])                      # (BT, 128)
    # v = H^T @ zt2        (sum over r for each t lane)
    v = _DOT(hf * zt2e, tsum_ref[...])                   # (BT, NT)
    # corr = theta1 @ v    (theta1 flattened to NT*NT lanes, v broadcast)
    v_exp = _DOT(v, iexp_ref[...])                       # (BT, NT*NT)
    corr = _DOT(t1 * v_exp, isum_ref[...])               # (BT, NT)

    zt_ref[...] = (sh + corr + t3).astype(zt_ref.dtype)
    # W = H^T: pure lane permutation of the resident H block (exact 0/1 matmul),
    # stored as a fully lane-dense (BT, 128) slab.
    w_ref[...] = _DOT(hf, wperm_ref[...]).astype(w_ref.dtype)
    # TODO(synk): zt's (BT, NT=8) store is a masked partial store (~3% of HBM
    # traffic); could be written batch-on-lanes if it ever shows up in traces.


def detnet_linear_forward(theta1, theta3, H, y, shatt, *, block_b=4096):
    """zt = shatt + theta1 @ (H^T @ (y - H @ shatt)) + theta3, per batch row.

    theta1: (1, NT, NT) shared over batch, or (B, NT, NT) per-batch (PyTorch
            parameter layout).  theta3: (1, NT) or (NT,).
    H: (B, NR, NT), y: (B, NR), shatt: (B, NT).
    Returns (zt (B, NT), {'W': H^T (B, NT, NR)}).
    """
    B, NR, NT = H.shape
    L = NR * NT                      # 128 for the module's default sizes
    f32 = jnp.float32

    H = jnp.asarray(H, f32)
    y = jnp.asarray(y, f32)
    shatt = jnp.asarray(shatt, f32)
    theta1 = jnp.asarray(theta1, f32)
    theta3 = jnp.asarray(theta3, f32).reshape(1, NT)

    hf = H.reshape(B, L)                             # free contiguous flatten
    t1f = theta1.reshape(theta1.shape[0], NT * NT)
    shared_t1 = t1f.shape[0] == 1

    # --- constant selector / permutation matrices (tiny, VMEM-resident) -----
    k = np.arange(L)
    r_of_k, t_of_k = k // NT, k % NT
    texp = (t_of_k[None, :] == np.arange(NT)[:, None]).astype(np.float32)    # (NT, L)
    rsum = (r_of_k[:, None] == np.arange(NR)[None, :]).astype(np.float32)    # (L, NR)
    rexp = np.ascontiguousarray(rsum.T)                                      # (NR, L)
    tsum = np.ascontiguousarray(texp.T)                                      # (L, NT)
    j = np.arange(NT * NT)
    iexp = ((j % NT)[None, :] == np.arange(NT)[:, None]).astype(np.float32)  # (NT, NT*NT)
    isum = ((j // NT)[:, None] == np.arange(NT)[None, :]).astype(np.float32) # (NT*NT, NT)
    wperm = (k[None, :] == (t_of_k * NR + r_of_k)[:, None]).astype(np.float32)  # (L, L)

    # --- batch blocking: big blocks, no padding (ragged tail is masked) -----
    if B <= block_b:
        bt = B                       # single block; equals full dim -> legal
    else:
        bt = max(8, (block_b // 8) * 8)
    nb = pl.cdiv(B, bt)

    if shared_t1:
        t1_spec = pl.BlockSpec((1, NT * NT), lambda b: (0, 0))
    else:
        t1_spec = pl.BlockSpec((bt, NT * NT), lambda b: (b, 0))

    def const_spec(shape):
        return pl.BlockSpec(shape, lambda b: (0, 0))

    zt, w_flat = pl.pallas_call(
        _detnet_kernel,
        out_shape=(jax.ShapeDtypeStruct((B, NT), f32),
                   jax.ShapeDtypeStruct((B, L), f32)),
        grid=(nb,),
        in_specs=[
            t1_spec,                                   # theta1 (flattened)
            const_spec((1, NT)),                       # theta3
            const_spec((NT, L)),                       # texp
            const_spec((L, NR)),                       # rsum
            const_spec((NR, L)),                       # rexp
            const_spec((L, NT)),                       # tsum
            const_spec((NT, NT * NT)),                 # iexp
            const_spec((NT * NT, NT)),                 # isum
            const_spec((L, L)),                        # wperm
            pl.BlockSpec((bt, L), lambda b: (b, 0)),   # H (flattened)
            pl.BlockSpec((bt, NR), lambda b: (b, 0)),  # y
            pl.BlockSpec((bt, NT), lambda b: (b, 0)),  # shatt
        ],
        out_specs=(pl.BlockSpec((bt, NT), lambda b: (b, 0)),   # zt
                   pl.BlockSpec((bt, L), lambda b: (b, 0))),   # W (flattened)
        compiler_params=pltpu.CompilerParams(
            dimension_semantics=("parallel",)),
    )(t1f, theta3, jnp.asarray(texp), jnp.asarray(rsum), jnp.asarray(rexp),
      jnp.asarray(tsum), jnp.asarray(iexp), jnp.asarray(isum),
      jnp.asarray(wperm), hf, y, shatt)

    return zt, {"W": w_flat.reshape(B, NT, NR)}


def _reference(theta1, theta3, H, y, shatt):
    hp = lax.Precision.HIGHEST
    W = jnp.swapaxes(H, 1, 2)
    zt1 = jnp.matmul(theta1, W, precision=hp)
    zt2 = y - jnp.einsum("brt,bt->br", H, shatt, precision=hp)
    zt = shatt + jnp.einsum("bir,br->bi", zt1, zt2, precision=hp) + theta3
    return zt, W


if __name__ == "__main__":
    # params = {'NT': 4, 'NR': 8, 'batch_size': 2}  ->  NT = 8, NR = 16.
    NT, NR = 8, 16

    key = jax.random.PRNGKey(0)
    k1, k2, k3, k4, k5, k6, k7, k8 = jax.random.split(key, 8)

    theta1_shared = (0.001 * jax.random.normal(k1, (1, NT, NT))).astype(jnp.float32)
    theta3 = (0.001 * jax.random.normal(k2, (1, NT))).astype(jnp.float32)

    # --- Test 1: batch=2, per-batch theta1 (exact PyTorch parameter layout) --
    B = 2
    theta1_b = jnp.tile(theta1_shared, (B, 1, 1))
    H = jax.random.normal(k3, (B, NR, NT), dtype=jnp.float32)
    y = jax.random.normal(k4, (B, NR), dtype=jnp.float32)
    shatt = jax.random.normal(k5, (B, NT), dtype=jnp.float32)

    zt, helper = detnet_linear_forward(theta1_b, theta3, H, y, shatt)
    zt = jax.block_until_ready(zt)
    w_out = jax.block_until_ready(helper["W"])

    zt_ref, w_ref = _reference(theta1_b, theta3, H, y, shatt)
    assert zt.shape == (B, NT) and w_out.shape == (B, NT, NR)
    assert jnp.allclose(zt, zt_ref, atol=1e-4, rtol=1e-4)
    assert jnp.allclose(w_out, w_ref, atol=1e-5, rtol=1e-5)

    # --- Test 2: shared theta1, B=300 with block_b=128 -> multi-block grid ---
    # with a ragged (masked) tail block, exercising the no-padding path.
    B2 = 300
    H2 = jax.random.normal(k6, (B2, NR, NT), dtype=jnp.float32)
    y2 = jax.random.normal(k7, (B2, NR), dtype=jnp.float32)
    s2 = jax.random.normal(k8, (B2, NT), dtype=jnp.float32)

    zt_big, helper_big = detnet_linear_forward(theta1_shared, theta3, H2, y2,
                                               s2, block_b=128)
    zt_big = jax.block_until_ready(zt_big)

    zt_big_ref, w_big_ref = _reference(theta1_shared, theta3, H2, y2, s2)
    assert zt_big.shape == (B2, NT)
    assert jnp.allclose(zt_big, zt_big_ref, atol=1e-4, rtol=1e-4)
    assert jnp.allclose(helper_big["W"], w_big_ref, atol=1e-5, rtol=1e-5)

    print("KERNEL_OK")
</pallas_src>

<mosaic_0001>
module attributes {stable_mosaic.version = 11 : i64} {
  func.func @_detnet_kernel(%arg0: i32, %arg1: memref<2x64xf32, #tpu.memory_space<vmem>>, %arg2: memref<1x8xf32, #tpu.memory_space<vmem>>, %arg3: memref<8x128xf32, #tpu.memory_space<vmem>>, %arg4: memref<128x16xf32, #tpu.memory_space<vmem>>, %arg5: memref<16x128xf32, #tpu.memory_space<vmem>>, %arg6: memref<128x8xf32, #tpu.memory_space<vmem>>, %arg7: memref<8x64xf32, #tpu.memory_space<vmem>>, %arg8: memref<64x8xf32, #tpu.memory_space<vmem>>, %arg9: memref<128x128xf32, #tpu.memory_space<vmem>>, %arg10: memref<2x128xf32, #tpu.memory_space<vmem>>, %arg11: memref<2x16xf32, #tpu.memory_space<vmem>>, %arg12: memref<2x8xf32, #tpu.memory_space<vmem>>, %arg13: memref<2x8xf32, #tpu.memory_space<vmem>>, %arg14: memref<2x128xf32, #tpu.memory_space<vmem>>) attributes {dimension_semantics = [#tpu.dimension_semantics<parallel>], iteration_bounds = array<i64: 1>, scalar_prefetch = 0 : i64, scratch_operands = 0 : i64, tpu.core_type = #tpu.core_type<tc>, window_params = [{transform_indices = @transform_0, window_bounds = array<i64: 2, 64>}, {pipeline_mode = #tpu.pipeline_mode<synchronous>, transform_indices = @transform_1, window_bounds = array<i64: 1, 8>}, {pipeline_mode = #tpu.pipeline_mode<synchronous>, transform_indices = @transform_2, window_bounds = array<i64: 8, 128>}, {pipeline_mode = #tpu.pipeline_mode<synchronous>, transform_indices = @transform_3, window_bounds = array<i64: 128, 16>}, {pipeline_mode = #tpu.pipeline_mode<synchronous>, transform_indices = @transform_4, window_bounds = array<i64: 16, 128>}, {pipeline_mode = #tpu.pipeline_mode<synchronous>, transform_indices = @transform_5, window_bounds = array<i64: 128, 8>}, {pipeline_mode = #tpu.pipeline_mode<synchronous>, transform_indices = @transform_6, window_bounds = array<i64: 8, 64>}, {pipeline_mode = #tpu.pipeline_mode<synchronous>, transform_indices = @transform_7, window_bounds = array<i64: 64, 8>}, {pipeline_mode = #tpu.pipeline_mode<synchronous>, transform_indices = @transform_8, window_bounds = array<i64: 128, 128>}, {transform_indices = @transform_9, window_bounds = array<i64: 2, 128>}, {transform_indices = @transform_10, window_bounds = array<i64: 2, 16>}, {transform_indices = @transform_11, window_bounds = array<i64: 2, 8>}, {transform_indices = @transform_12, window_bounds = array<i64: 2, 8>}, {transform_indices = @transform_13, window_bounds = array<i64: 2, 128>}]} {
    %c0 = arith.constant 0 : index
    %c0_0 = arith.constant 0 : index
    %0 = vector.load %arg10[%c0, %c0_0] : memref<2x128xf32, #tpu.memory_space<vmem>>, vector<2x128xf32>
    %c0_1 = arith.constant 0 : index
    %c0_2 = arith.constant 0 : index
    %1 = vector.load %arg11[%c0_1, %c0_2] : memref<2x16xf32, #tpu.memory_space<vmem>>, vector<2x16xf32>
    %c0_3 = arith.constant 0 : index
    %c0_4 = arith.constant 0 : index
    %2 = vector.load %arg12[%c0_3, %c0_4] : memref<2x8xf32, #tpu.memory_space<vmem>>, vector<2x8xf32>
    %c0_5 = arith.constant 0 : index
    %c0_6 = arith.constant 0 : index
    %3 = vector.load %arg1[%c0_5, %c0_6] : memref<2x64xf32, #tpu.memory_space<vmem>>, vector<2x64xf32>
    %c0_7 = arith.constant 0 : index
    %c0_8 = arith.constant 0 : index
    %4 = vector.load %arg2[%c0_7, %c0_8] : memref<1x8xf32, #tpu.memory_space<vmem>>, vector<1x8xf32>
    %c0_9 = arith.constant 0 : index
    %c0_10 = arith.constant 0 : index
    %5 = vector.load %arg3[%c0_9, %c0_10] : memref<8x128xf32, #tpu.memory_space<vmem>>, vector<8x128xf32>
    %cst = arith.constant dense<0.000000e+00> : vector<2x128xf32>
    %6 = tpu.matmul %2, %5, %cst {dimension_numbers = #tpu.dot_dimension_numbers<[1], [0], [0], [1], [0, 0, 1, 1], [], []>, precision = #tpu.contract_precision<fp32>} : vector<2x8xf32>, vector<8x128xf32>, vector<2x128xf32> -> vector<2x128xf32>
    %7 = arith.mulf %0, %6 : vector<2x128xf32>
    %c0_11 = arith.constant 0 : index
    %c0_12 = arith.constant 0 : index
    %8 = vector.load %arg4[%c0_11, %c0_12] : memref<128x16xf32, #tpu.memory_space<vmem>>, vector<128x16xf32>
    %cst_13 = arith.constant dense<0.000000e+00> : vector<2x16xf32>
    %9 = tpu.matmul %7, %8, %cst_13 {dimension_numbers = #tpu.dot_dimension_numbers<[1], [0], [0], [1], [0, 0, 1, 1], [], []>, precision = #tpu.contract_precision<fp32>} : vector<2x128xf32>, vector<128x16xf32>, vector<2x16xf32> -> vector<2x16xf32>
    %10 = arith.subf %1, %9 : vector<2x16xf32>
    %c0_14 = arith.constant 0 : index
    %c0_15 = arith.constant 0 : index
    %11 = vector.load %arg5[%c0_14, %c0_15] : memref<16x128xf32, #tpu.memory_space<vmem>>, vector<16x128xf32>
    %cst_16 = arith.constant dense<0.000000e+00> : vector<2x128xf32>
    %12 = tpu.matmul %10, %11, %cst_16 {dimension_numbers = #tpu.dot_dimension_numbers<[1], [0], [0], [1], [0, 0, 1, 1], [], []>, precision = #tpu.contract_precision<fp32>} : vector<2x16xf32>, vector<16x128xf32>, vector<2x128xf32> -> vector<2x128xf32>
    %13 = arith.mulf %0, %12 : vector<2x128xf32>
    %c0_17 = arith.constant 0 : index
    %c0_18 = arith.constant 0 : index
    %14 = vector.load %arg6[%c0_17, %c0_18] : memref<128x8xf32, #tpu.memory_space<vmem>>, vector<128x8xf32>
    %cst_19 = arith.constant dense<0.000000e+00> : vector<2x8xf32>
    %15 = tpu.matmul %13, %14, %cst_19 {dimension_numbers = #tpu.dot_dimension_numbers<[1], [0], [0], [1], [0, 0, 1, 1], [], []>, precision = #tpu.contract_precision<fp32>} : vector<2x128xf32>, vector<128x8xf32>, vector<2x8xf32> -> vector<2x8xf32>
    %c0_20 = arith.constant 0 : index
    %c0_21 = arith.constant 0 : index
    %16 = vector.load %arg7[%c0_20, %c0_21] : memref<8x64xf32, #tpu.memory_space<vmem>>, vector<8x64xf32>
    %cst_22 = arith.constant dense<0.000000e+00> : vector<2x64xf32>
    %17 = tpu.matmul %15, %16, %cst_22 {dimension_numbers = #tpu.dot_dimension_numbers<[1], [0], [0], [1], [0, 0, 1, 1], [], []>, precision = #tpu.contract_precision<fp32>} : vector<2x8xf32>, vector<8x64xf32>, vector<2x64xf32> -> vector<2x64xf32>
    %18 = arith.mulf %3, %17 : vector<2x64xf32>
    %c0_23 = arith.constant 0 : index
    %c0_24 = arith.constant 0 : index
    %19 = vector.load %arg8[%c0_23, %c0_24] : memref<64x8xf32, #tpu.memory_space<vmem>>, vector<64x8xf32>
    %cst_25 = arith.constant dense<0.000000e+00> : vector<2x8xf32>
    %20 = tpu.matmul %18, %19, %cst_25 {dimension_numbers = #tpu.dot_dimension_numbers<[1], [0], [0], [1], [0, 0, 1, 1], [], []>, precision = #tpu.contract_precision<fp32>} : vector<2x64xf32>, vector<64x8xf32>, vector<2x8xf32> -> vector<2x8xf32>
    %21 = arith.addf %2, %20 : vector<2x8xf32>
    %22 = vector.broadcast %4 : vector<1x8xf32> to vector<2x8xf32>
    %23 = arith.addf %21, %22 : vector<2x8xf32>
    %c0_26 = arith.constant 0 : index
    %c0_27 = arith.constant 0 : index
    %24 = vector.load %arg13[%c0_26, %c0_27] : memref<2x8xf32, #tpu.memory_space<vmem>>, vector<2x8xf32>
    tpu.vector_store %arg13[%c0_26, %c0_27], %23 {strides = array<i32>} : memref<2x8xf32, #tpu.memory_space<vmem>>, vector<2x8xf32>,
    %c0_28 = arith.constant 0 : index
    %c0_29 = arith.constant 0 : index
    %25 = vector.load %arg9[%c0_28, %c0_29] : memref<128x128xf32, #tpu.memory_space<vmem>>, vector<128x128xf32>
    %cst_30 = arith.constant dense<0.000000e+00> : vector<2x128xf32>
    %26 = tpu.matmul %0, %25, %cst_30 {dimension_numbers = #tpu.dot_dimension_numbers<[1], [0], [0], [1], [0, 0, 1, 1], [], []>, precision = #tpu.contract_precision<fp32>} : vector<2x128xf32>, vector<128x128xf32>, vector<2x128xf32> -> vector<2x128xf32>
    %c0_31 = arith.constant 0 : index
    %c0_32 = arith.constant 0 : index
    %27 = vector.load %arg14[%c0_31, %c0_32] : memref<2x128xf32, #tpu.memory_space<vmem>>, vector<2x128xf32>
    tpu.vector_store %arg14[%c0_31, %c0_32], %26 {strides = array<i32>} : memref<2x128xf32, #tpu.memory_space<vmem>>, vector<2x128xf32>,
    return
  }
  func.func @transform_0(%arg0: i32) -> (i32, i32) {
    %c0_i32 = arith.constant 0 : i32
    %c0_i32_0 = arith.constant 0 : i32
    return %arg0, %c0_i32 : i32, i32
  }
  func.func @transform_1(%arg0: i32) -> (i32, i32) {
    %c0_i32 = arith.constant 0 : i32
    %c0_i32_0 = arith.constant 0 : i32
    %c0_i32_1 = arith.constant 0 : i32
    return %c0_i32, %c0_i32_0 : i32, i32
  }
  func.func @transform_2(%arg0: i32) -> (i32, i32) {
    %c0_i32 = arith.constant 0 : i32
    %c0_i32_0 = arith.constant 0 : i32
    %c0_i32_1 = arith.constant 0 : i32
    return %c0_i32, %c0_i32_0 : i32, i32
  }
  func.func @transform_3(%arg0: i32) -> (i32, i32) {
    %c0_i32 = arith.constant 0 : i32
    %c0_i32_0 = arith.constant 0 : i32
    %c0_i32_1 = arith.constant 0 : i32
    return %c0_i32, %c0_i32_0 : i32, i32
  }
  func.func @transform_4(%arg0: i32) -> (i32, i32) {
    %c0_i32 = arith.constant 0 : i32
    %c0_i32_0 = arith.constant 0 : i32
    %c0_i32_1 = arith.constant 0 : i32
    return %c0_i32, %c0_i32_0 : i32, i32
  }
  func.func @transform_5(%arg0: i32) -> (i32, i32) {
    %c0_i32 = arith.constant 0 : i32
    %c0_i32_0 = arith.constant 0 : i32
    %c0_i32_1 = arith.constant 0 : i32
    return %c0_i32, %c0_i32_0 : i32, i32
  }
  func.func @transform_6(%arg0: i32) -> (i32, i32) {
    %c0_i32 = arith.constant 0 : i32
    %c0_i32_0 = arith.constant 0 : i32
    %c0_i32_1 = arith.constant 0 : i32
    return %c0_i32, %c0_i32_0 : i32, i32
  }
  func.func @transform_7(%arg0: i32) -> (i32, i32) {
    %c0_i32 = arith.constant 0 : i32
    %c0_i32_0 = arith.constant 0 : i32
    %c0_i32_1 = arith.constant 0 : i32
    return %c0_i32, %c0_i32_0 : i32, i32
  }
  func.func @transform_8(%arg0: i32) -> (i32, i32) {
    %c0_i32 = arith.constant 0 : i32
    %c0_i32_0 = arith.constant 0 : i32
    %c0_i32_1 = arith.constant 0 : i32
    return %c0_i32, %c0_i32_0 : i32, i32
  }
  func.func @transform_9(%arg0: i32) -> (i32, i32) {
    %c0_i32 = arith.constant 0 : i32
    %c0_i32_0 = arith.constant 0 : i32
    return %arg0, %c0_i32 : i32, i32
  }
  func.func @transform_10(%arg0: i32) -> (i32, i32) {
    %c0_i32 = arith.constant 0 : i32
    %c0_i32_0 = arith.constant 0 : i32
    return %arg0, %c0_i32 : i32, i32
  }
  func.func @transform_11(%arg0: i32) -> (i32, i32) {
    %c0_i32 = arith.constant 0 : i32
    %c0_i32_0 = arith.constant 0 : i32
    return %arg0, %c0_i32 : i32, i32
  }
  func.func @transform_12(%arg0: i32) -> (i32, i32) {
    %c0_i32 = arith.constant 0 : i32
    %c0_i32_0 = arith.constant 0 : i32
    return %arg0, %c0_i32 : i32, i32
  }
  func.func @transform_13(%arg0: i32) -> (i32, i32) {
    %c0_i32 = arith.constant 0 : i32
    %c0_i32_0 = arith.constant 0 : i32
    return %arg0, %c0_i32 : i32, i32
  }
}

</mosaic_0001>

<bundles_post_ra>
// kernel: tpu_custom_call.1
= control target key start
LH: loop header
LB: loop body
LE: loop exit
PB: predicated region body
PF: predicated region fallthrough
CT: control target
= control target key end

     0   :  { %19 = vsyncpa [#allocation3], 0  ;;  %vm51_vm0 = vcmask 64512   ;;  %v5863_v2 = vmov 0.0   ;;  %vm5864_vm1 = vmmov 0   ;;  %v5865_v9 = vmov 0.0|0.0   ;;  %s7146_s0 = inlined_call_operand.vmem [shape: f32[2,64], index: 0, kind: input, shape index: {}]   ;;  %s7147_s1 = inlined_call_operand.vmem [shape: f32[1,8], index: 1, kind: input, shape index: {}]   ;;  %s7148_s2 = inlined_call_operand.vmem [shape: f32[8,128], index: 2, kind: input, shape index: {}]   ;;  %s7149_s3 = inlined_call_operand.vmem [shape: f32[128,16], index: 3, kind: input, shape index: {}]   ;;  %s7150_s4 = inlined_call_operand.vmem [shape: f32[16,128], index: 4, kind: input, shape index: {}]   ;;  %s7151_s5 = inlined_call_operand.vmem [shape: f32[128,8], index: 5, kind: input, shape index: {}]   ;;  %s7152_s6 = inlined_call_operand.vmem [shape: f32[8,64], index: 6, kind: input, shape index: {}]   ;;  %s7153_s7 = inlined_call_operand.vmem [shape: f32[64,8], index: 7, kind: input, shape index: {}]   ;;  %s7154_s8 = inlined_call_operand.vmem [shape: f32[128,128], index: 8, kind: input, shape index: {}]   ;;  %s7155_s9 = inlined_call_operand.vmem [shape: f32[2,128], index: 9, kind: input, shape index: {}]   ;;  %s7156_s10 = inlined_call_operand.vmem [shape: f32[2,16], index: 10, kind: input, shape index: {}]   ;;  %s7157_s11 = inlined_call_operand.vmem [shape: f32[2,8], index: 11, kind: input, shape index: {}]   ;;  %s7158_s12 = inlined_call_operand.hbm [shape: f32[2,8], index: 12, kind: output, shape index: {0}]   ;;  %s7159_s13 = inlined_call_operand.hbm [shape: f32[2,128], index: 13, kind: output, shape index: {1}]  }
   0x1   :  { %v50_v0 = vld [vmem:[%s7148_s2] sm:$0xff]  ;;  %4382 = vmatprep.subr.mxu0 %v5863_v2  ;;  %4384 = vmatprep.mubr.msk.f32.mxu0 %vm5864_vm1, %v5863_v2  ;;  %v503_v6 = vld [vmem:[%s7149_s3 + $0x8] sm:$0xff]  ;;  %v504_v7 = vld [vmem:[%s7149_s3 + $0x10] sm:$0xff] }
   0x2   :  { %v47_v1 = vld [vmem:[%s7157_s11] sm:$0x3]  ;;  %v5945_v3 = vand.u32 4294901760, %v50_v0  ;;  %5228 = vmatprep.subr.bf16.mxu1 %v5865_v9  ;;  %v522_v11 = vand.u32 4294901760, %v503_v6  ;;  %v505_v12 = vld [vmem:[%s7149_s3 + $0x18] sm:$0xff]  ;;  %v525_v13 = vand.u32 4294901760, %v504_v7  ;;  %4444 = vmatprep.mubr.msk.f32.mxu1 %vm5864_vm1, %v5863_v2 }
   0x3   :  { %v53_v4 = vsel %vm51_vm0, %v47_v1, 0  ;;  %v502_v5 = vld [vmem:[%s7149_s3] sm:$0xff]  ;;  %v528_v16 = vand.u32 4294901760, %v505_v12  ;;  %v507_v17 = vld [vmem:[%s7149_s3 + $0x28] sm:$0xff]  ;;  %v508_v19 = vld [vmem:[%s7149_s3 + $0x30] sm:$0xff] }
   0x4   :  { %v5959_v8 = vand.u32 4294901760, %v53_v4  ;;  %v519_v10 = vand.u32 4294901760, %v502_v5  ;;  %v506_v14 = vld [vmem:[%s7149_s3 + $0x20] sm:$0xff]  ;;  %4383 = vmatpush3.msra.mxu0 %v5945_v3  ;;  %v133_v15 = vsub.f32 %v50_v0, %v5945_v3  ;;  %v5984_v23 = vsub.f32 %v503_v6, %v522_v11  ;;  %v509_v24 = vld [vmem:[%s7149_s3 + $0x38] sm:$0xff]  ;;  %v511_v30 = vld [vmem:[%s7149_s3 + $0x48] sm:$0xff] }
   0x5   :  { %v531_v18 = vand.u32 4294901760, %v506_v14  ;;  %4387 = vmatprep.subr.mxu0 %v5863_v2  ;;  %v510_v25 = vld [vmem:[%s7149_s3 + $0x40] sm:$0xff]  ;;  %v5992_v27 = vpack.c.bf16 %v528_v16, %v525_v13  ;;  %v5994_v28 = vsub.f32 %v504_v7, %v525_v13  ;;  %v5996_v29 = vsub.f32 %v505_v12, %v528_v16 }
   0x6   :  { %v122_v20 = vsub.f32 %v53_v4, %v5959_v8  ;;  %v5980_v21 = vpack.c.bf16 %v522_v11, %v519_v10  ;;  %v5982_v22 = vsub.f32 %v502_v5, %v519_v10  ;;  %v134_v26 = vand.u32 4294901760, %v133_v15 }
   0x7   :  { %20 = vsyncpa [#allocation5], 0  ;;  %v534_v32 = vand.u32 4294901760, %v507_v17  ;;  %v6002_v33 = vsub.f32 %v506_v14, %v531_v18  ;;  %v537_v34 = vand.u32 4294901760, %v508_v19  ;;  %v540_v36 = vand.u32 4294901760, %v509_v24  ;;  %v512_v50 = vld [vmem:[%s7149_s3 + $0x50] sm:$0xff] }
   0x8   :  { %v123_v31 = vand.u32 4294901760, %v122_v20  ;;  %5230 = vmatpush3.bf16.msra.mxu1 %v5980_v21  ;;  %v135_v35 = vsub.f32 %v133_v15, %v134_v26  ;;  %v543_v37 = vand.u32 4294901760, %v510_v25  ;;  %v546_v41 = vand.u32 4294901760, %v511_v30  ;;  %v513_v51 = vld [vmem:[%s7149_s3 + $0x58] sm:$0xff]  ;;  %v514_v55 = vld [vmem:[%s7149_s3 + $0x60] sm:$0xff]  ;;  %v515_v56 = vld [vmem:[%s7149_s3 + $0x68] sm:$0xff] }
   0x9   :  { %5231 = vmatprep.subr.bf16.mxu1 %v5865_v9  ;;  %v6005_v39 = vsub.f32 %v507_v17, %v534_v32  ;;  %v6007_v40 = vsub.f32 %v508_v19, %v537_v34  ;;  %v6009_v43 = vsub.f32 %v509_v24, %v540_v36  ;;  %v6012_v45 = vpack.c.bf16 %v534_v32, %v531_v18  ;;  %v516_v60 = vld [vmem:[%s7149_s3 + $0x70] sm:$0xff]  ;;  %v517_v61 = vld [vmem:[%s7149_s3 + $0x78] sm:$0xff]  ;;  %s5866_s27 = smov [#allocation2]  }
   0xa   :  { %v124_v38 = vsub.f32 %v122_v20, %v123_v31  ;;  %v136_v42 = vand.u32 4294901760, %v135_v35  ;;  %v6014_v46 = vsub.f32 %v510_v25, %v543_v37  ;;  %v6016_v47 = vsub.f32 %v511_v30, %v546_v41  ;;  %s3957_s28 = sshll.u32 %s5866_s27, 4  ;;  %s3958_s28 = int_to_ptr.vmem [resolvable:$true] %s3957_s28 }
   0xb   :  { %v6023_v48 = vpack.c.bf16 %v540_v36, %v537_v34  ;;  %v6027_v49 = vpack.c.bf16 %v546_v41, %v543_v37  ;;  %v549_v52 = vand.u32 4294901760, %v512_v50  ;;  %v552_v53 = vand.u32 4294901760, %v513_v51  ;;  %s5815_s29 = scalar_lea.vmem %s3958_s28, 32  ;;  %p5820_p1 = scmp.lt.s32.totalorder %s3958_s28, %s3958_s28 }
   0xc   :  { %v125_v44 = vand.u32 4294901760, %v124_v38  ;;  %5233 = vmatpush3.bf16.msra.mxu1 %v5992_v27  ;;  %v555_v57 = vand.u32 4294901760, %v514_v55  ;;  %v558_v58 = vand.u32 4294901760, %v515_v56  ;;  %v564_v4 = vand.u32 4294901760, %v517_v61  ;;  %p5816_p0 = scmp.ne.s32.totalorder %s3958_s28, %s5815_s29  ;;  %p5821_p2 = scmp.lt.s32.totalorder %s5815_s29, %s5815_s29 }
   0xd   :  { %5234 = vmatprep.subr.bf16.mxu1 %v5865_v9  ;;  %v6057_v54 = vpack.c.bf16 %v552_v53, %v549_v52  ;;  %v6075_v62 = vsub.f32 %v512_v50, %v549_v52  ;;  %v6077_v63 = vsub.f32 %v513_v51, %v552_v53  ;;  %v612_v5 = vand.u32 4294901760, %v5982_v22 }
   0xe   :  { %4385 = vmatmul.mubr.f32.vlgmr.msra.gmra.mrb[0].mxu0 %v125_v44  ;;  %v6067_v59 = vpack.c.bf16 %v558_v58, %v555_v57  ;;  %v6080_v0 = vsub.f32 %v514_v55, %v555_v57  ;;  %v6082_v1 = vsub.f32 %v515_v56, %v558_v58  ;;  %v619_v6 = vand.u32 4294901760, %v5984_v23  ;;  %p5822_p3 = por %p5821_p2, %p5820_p1 }
   0xf   :  { %4388 = vmatpush3.msra.mxu0 %v136_v42  ;;  %4389 = vmatprep.mubr.msk.f32.mxu0 %vm5864_vm1, %v5863_v2  ;;  %v6091_v10 = vsub.f32 %v517_v61, %v564_v4  ;;  %v613_v11 = vsub.f32 %v5982_v22, %v612_v5  ;;  %v626_v14 = vand.u32 4294901760, %v5994_v28  ;;  %v640_v25 = vand.u32 4294901760, %v6002_v33 }
  0x10   :  { %4392 = vmatprep.subr.mxu0 %v5863_v2  ;;  %5236 = vmatpush3.bf16.msra.mxu1 %v6012_v45  ;;  %v620_v12 = vsub.f32 %v5984_v23, %v619_v6  ;;  %v654_v36 = vand.u32 4294901760, %v6007_v40  ;;  %v661_v37 = vand.u32 4294901760, %v6009_v43  ;;  %v668_v51 = vand.u32 4294901760, %v6014_v46  ;;  %p5823_p4 = pnand %p5822_p3, %p5816_p0 }
  0x11   :  { %5237 = vmatprep.subr.bf16.mxu1 %v5865_v9  ;;  %v614_v13 = vand.u32 4294901760, %v613_v11  ;;  %v627_v17 = vsub.f32 %v5994_v28, %v626_v14  ;;  %v675_v52 = vand.u32 4294901760, %v6016_v47  ;;  %v689_v61 = vand.u32 4294901760, %v6077_v63 }
  0x12   :  { %v621_v16 = vand.u32 4294901760, %v620_v12  ;;  %v655_v41 = vsub.f32 %v6007_v40, %v654_v36  ;;  %v662_v42 = vsub.f32 %v6009_v43, %v661_v37  ;;  %v669_v55 = vsub.f32 %v6014_v46, %v668_v51 }
  0x13   :  { %v676_v56 = vsub.f32 %v6016_v47, %v675_v52  ;;  %v690_v11 = vsub.f32 %v6077_v63, %v689_v61  ;;  %vm1162_vm2 = vcmask 130048   ;;  %vm2742_vm3 = vcmask 523264  }
  0x14   :  { %5239 = vmatpush3.bf16.msra.mxu1 %v6023_v48  ;;  %v6109_v19 = vpack.c.bf16 %v621_v16, %v614_v13  ;;  %v656_v44 = vand.u32 4294901760, %v655_v41  ;;  %v663_v50 = vand.u32 4294901760, %v662_v42  ;;  %v670_v57 = vand.u32 4294901760, %v669_v55 }
  0x15   :  { %5240 = vmatprep.subr.bf16.mxu1 %v5865_v9  ;;  %v677_v58 = vand.u32 4294901760, %v676_v56  ;;  %v691_v13 = vand.u32 4294901760, %v690_v11  ;;  %v696_v16 = vand.u32 4294901760, %v6080_v0  ;;  %v5286_v11 = vpack.c.bf16 %v6009_v43, %v6007_v40 }
  0x16   :  { %4390 = vmatmul.mubr.f32.vlgmr.msra.gmra.mrb[0].mxu0 %v5959_v8  ;;  %v5262_v53 = vpack.c.bf16 %v663_v50, %v656_v44  ;;  %v7165_v43 = vand.u32 4294901760, %v6091_v10  ;;  %vm3291_vm4 = vcmask 58368  }
  0x17   :  { %4393 = vmatpush3.msra.mxu0 %v133_v15  ;;  %4394 = vmatprep.mubr.msk.f32.mxu0 %vm5864_vm1, %v5863_v2  ;;  %v633_v15 = vand.u32 4294901760, %v5996_v29 }
  0x18   :  { %4397 = vmatprep.subr.mxu0 %v5863_v2  ;;  %5242 = vmatpush3.bf16.msra.mxu1 %v6027_v49 }
  0x19   :  { %5243 = vmatprep.subr.bf16.mxu1 %v5865_v9  ;;  %v634_v18 = vsub.f32 %v5996_v29, %v633_v15 }
  0x1b   :  { %v635_v24 = vand.u32 4294901760, %v634_v18 }
  0x1c   :  { %5245 = vmatpush3.bf16.msra.mxu1 %v6057_v54 }
  0x1d   :  { %5246 = vmatprep.subr.bf16.mxu1 %v5865_v9 }
  0x1e   :  { %4395 = vmatmul.mubr.f32.vlgmr.msra.gmra.mrb[0].mxu0 %v122_v20  ;;  %v628_v20 = vand.u32 4294901760, %v627_v17  ;;  %v7162_v17 = vand.u32 4294901760, %v6082_v1 }
  0x1f   :  { %4398 = vmatpush3.msra.mxu0 %v5945_v3  ;;  %4399 = vmatprep.mubr.msk.f32.mxu0 %vm5864_vm1, %v5863_v2 }
  0x20   :  { %4402 = vmatprep.subr.mxu0 %v5863_v2  ;;  %5248 = vmatpush3.bf16.msra.mxu1 %v6067_v59  ;;  %v5256_v30 = vpack.c.bf16 %v635_v24, %v628_v20  ;;  %v697_v20 = vsub.f32 %v6080_v0, %v696_v16  ;;  %v704_v24 = vsub.f32 %v6082_v1, %v7162_v17 }
  0x21   :  { %5249 = vmatprep.subr.bf16.mxu1 %v5865_v9 }
  0x26   :  { %4400 = vmatmul.mubr.f32.vlgmr.msra.gmra.mrb[0].mxu0 %v123_v31  ;;  %v641_v31 = vsub.f32 %v6002_v33, %v640_v25 }
  0x27   :  { %4403 = vmatpush3.msra.mxu0 %v134_v26  ;;  %4404 = vmatprep.mubr.msk.f32.mxu0 %vm5864_vm1, %v5863_v2  ;;  %v647_v26 = vand.u32 4294901760, %v6005_v39 }
  0x28   :  { %4407 = vmatprep.subr.mxu0 %v5863_v2  ;;  %v642_v34 = vand.u32 4294901760, %v641_v31  ;;  %v698_v31 = vand.u32 4294901760, %v697_v20  ;;  %v5295_v20 = vpack.c.bf16 %v6082_v1, %v6080_v0 }
  0x29   :  { %v648_v32 = vsub.f32 %v6005_v39, %v647_v26 }
  0x2b   :  { %v649_v35 = vand.u32 4294901760, %v648_v32  ;;  %v705_v32 = vand.u32 4294901760, %v704_v24 }
  0x2d   :  { %v5259_v38 = vpack.c.bf16 %v649_v35, %v642_v34  ;;  %v7160_v35 = vand.u32 4294901760, %v6091_v10  ;;  %v5271_v41 = vpack.c.bf16 %v705_v32, %v698_v31  ;;  %v6178_v31 = vld [vmem:[%s7155_s9] sm:$0x3] }
  0x2e   :  { %4405 = vmatmul.mubr.f32.vlgmr.msra.gmra.mrb[0].mxu0 %v5959_v8 }
  0x2f   :  { %4408 = vmatpush3.msra.mxu0 %v5945_v3  ;;  %4409 = vmatprep.mubr.msk.f32.mxu0 %vm5864_vm1, %v5863_v2  ;;  %v561_v3 = vand.u32 4294901760, %v516_v60  ;;  %v718_v44 = vsub.f32 %v6091_v10, %v7160_v35 }
  0x30   :  { %5372 = vmatprep.subr.bf16.mxu0 %v5865_v9 }
  0x31   :  { %v6087_v7 = vpack.c.bf16 %v564_v4, %v561_v3  ;;  %v719_v55 = vand.u32 4294901760, %v718_v44 }
  0x33   :  { %5251 = vmatpush3.bf16.msra.mxu1 %v6087_v7 }
  0x34   :  { %5252 = vmatprep.subr.bf16.mxu1 %v5865_v9 }
  0x36   :  { %4410 = vmatmul.mubr.f32.vlgmr.msra.gmra.mrb[0].mxu0 %v5959_v8  ;;  %v6089_v8 = vsub.f32 %v516_v60, %v561_v3  ;;  %v682_v60 = vand.u32 4294901760, %v6075_v62  ;;  %v5265_v3 = vpack.c.bf16 %v677_v58, %v670_v57  ;;  %v5277_v57 = vpack.c.bf16 %v5984_v23, %v5982_v22 }
  0x37   :  { %4626 = vmatprep.mubr.msk.f32.mxu0 %vm5864_vm1, %v5863_v2  ;;  %v5280_v58 = vpack.c.bf16 %v5996_v29, %v5994_v28  ;;  %v5331_v22 = vpack.c.bf16 %v647_v26, %v640_v25  ;;  %v5334_v23 = vpack.c.bf16 %v661_v37, %v654_v36  ;;  %v5337_v28 = vpack.c.bf16 %v675_v52, %v668_v51  ;;  %v1628_v26 = vld [vmem:[%s7151_s5 + $0x10] sm:$0xff]  ;;  %v1629_v36 = vld [vmem:[%s7151_s5 + $0x18] sm:$0xff] }
  0x38   :  { %v683_v4 = vsub.f32 %v6075_v62, %v682_v60  ;;  %v7161_v34 = vand.u32 4294901760, %v6089_v8  ;;  %v5298_v24 = vpack.c.bf16 %v6091_v10, %v6089_v8  ;;  %v5340_v29 = vpack.c.bf16 %v689_v61, %v682_v60  ;;  %v1626_v10 = vld [vmem:[%s7151_s5] sm:$0xff] }
  0x39   :  { %v7164_v40 = vand.u32 4294901760, %v6089_v8  ;;  %v1649_v52 = vand.u32 4294901760, %v1628_v26 }
  0x3a   :  { %v684_v12 = vand.u32 4294901760, %v683_v4  ;;  %v711_v42 = vsub.f32 %v6089_v8, %v7161_v34  ;;  %v5283_v4 = vpack.c.bf16 %v6005_v39, %v6002_v33  ;;  %v7163_v33 = vand.u32 4294901760, %v6082_v1 }
  0x3b   :  { %v6331_v60 = vsub.f32 %v1628_v26, %v1649_v52 }
  0x3c   :  { %v5268_v18 = vpack.c.bf16 %v691_v13, %v684_v12  ;;  %v712_v50 = vand.u32 4294901760, %v711_v42  ;;  %v5289_v12 = vpack.c.bf16 %v6016_v47, %v6014_v46  ;;  %v5292_v13 = vpack.c.bf16 %v6077_v63, %v6075_v62 }
  0x3d   :  { %v5343_v39 = vpack.c.bf16 %v7163_v33, %v696_v16  ;;  %v5346_v46 = vpack.c.bf16 %v7165_v43, %v7164_v40  ;;  %v1631_v16 = vld [vmem:[%s7151_s5 + $0x28] sm:$0xff]  ;;  %v46_v40 = vld [vmem:[%s7156_s10] sm:$0x3] }
  0x3e   :  { %v5274_v56 = vpack.c.bf16 %v719_v55, %v712_v50 }
 0x109   :  { %v497_v32 = vpop.f32.mrb[0].mxu0 }
 0x10a   :  { %v501_v42 = vmul.f32 %v497_v32, %v6178_v31  ;;  %v4411_v44 = vpop.f32.mrb[1].mxu0 }
 0x10c   :  { %v6181_v50 = vand.u32 4294901760, %v501_v42 }
 0x10e   :  { %v600_v55 = vsub.f32 %v501_v42, %v6181_v50 }
 0x110   :  { %v601_v35 = vand.u32 4294901760, %v600_v55 }
 0x112   :  { %v602_v34 = vsub.f32 %v600_v55, %v601_v35 }
 0x114   :  { %v603_v17 = vand.u32 4294901760, %v602_v34  ;;  %v1658_v34 = vand.u32 4294901760, %v1631_v16 }
 0x116   :  { %4445 = vmatmul.mubr.f32.vlgmr.msra.gmra.mrb[0].mxu1 %v603_v17 }
 0x117   :  { %5254 = vmatpush3.bf16.msra.mxu1 %v6109_v19  ;;  %4479 = vmatprep.mubr.msk.f32.mxu1 %vm5864_vm1, %v5863_v2  ;;  %v5325_v19 = vpack.c.bf16 %v619_v6, %v612_v5 }
 0x118   :  { %5255 = vmatprep.subr.bf16.mxu1 %v5865_v9 }
 0x11b   :  { %5257 = vmatpush3.bf16.msra.mxu1 %v5256_v30  ;;  %v5328_v30 = vpack.c.bf16 %v633_v15, %v626_v14  ;;  %v1627_v14 = vld [vmem:[%s7151_s5 + $0x8] sm:$0xff]  ;;  %v1643_v15 = vand.u32 4294901760, %v1626_v10 }
 0x11c   :  { %5258 = vmatprep.subr.bf16.mxu1 %v5865_v9  ;;  %v1646_v25 = vand.u32 4294901760, %v1627_v14 }
 0x11e   :  { %v6324_v37 = vpack.c.bf16 %v1646_v25, %v1643_v15  ;;  %v6328_v51 = vsub.f32 %v1627_v14, %v1646_v25 }
 0x11f   :  { %5260 = vmatpush3.bf16.msra.mxu1 %v5259_v38  ;;  %v6326_v38 = vsub.f32 %v1626_v10, %v1643_v15 }
 0x120   :  { %5261 = vmatprep.subr.bf16.mxu1 %v5865_v9  ;;  %v1743_v15 = vand.u32 4294901760, %v6328_v51 }
 0x121   :  { %v1736_v14 = vand.u32 4294901760, %v6326_v38 }
 0x123   :  { %5263 = vmatpush3.bf16.msra.mxu1 %v5262_v53  ;;  %v1652_v53 = vand.u32 4294901760, %v1629_v36  ;;  %v6461_v25 = vpack.c.bf16 %v1743_v15, %v1736_v14  ;;  %v1737_v26 = vsub.f32 %v6326_v38, %v1736_v14 }
 0x124   :  { %5264 = vmatprep.subr.bf16.mxu1 %v5865_v9 }
 0x125   :  { %v6333_v61 = vsub.f32 %v1629_v36, %v1652_v53  ;;  %v6342_v17 = vpack.c.bf16 %v1652_v53, %v1649_v52  ;;  %v1744_v36 = vsub.f32 %v6328_v51, %v1743_v15 }
 0x127   :  { %5266 = vmatpush3.bf16.msra.mxu1 %v5265_v3  ;;  %v1630_v3 = vld [vmem:[%s7151_s5 + $0x20] sm:$0xff] }
 0x128   :  { %5267 = vmatprep.subr.bf16.mxu1 %v5865_v9 }
 0x12b   :  { %5269 = vmatpush3.bf16.msra.mxu1 %v5268_v18  ;;  %v1655_v18 = vand.u32 4294901760, %v1630_v3 }
 0x12c   :  { %5270 = vmatprep.subr.bf16.mxu1 %v5865_v9 }
 0x12f   :  { %5272 = vmatpush3.bf16.msra.mxu1 %v5271_v41  ;;  %v6347_v41 = vsub.f32 %v1631_v16, %v1658_v34 }
 0x130   :  { %5273 = vmatprep.subr.bf16.mxu1 %v5865_v9 }
 0x133   :  { %5275 = vmatpush3.bf16.msra.mxu1 %v5274_v56  ;;  %v1632_v56 = vld [vmem:[%s7151_s5 + $0x30] sm:$0xff] }
 0x134   :  { %5276 = vmatprep.subr.bf16.mxu1 %v5865_v9 }
 0x136   :  { %4480 = vmatmul.mubr.f32.vlgmr.msra.gmra.mrb[0].mxu1 %v6181_v50 }
 0x137   :  { %5278 = vmatpush3.bf16.msra.mxu1 %v5277_v57  ;;  %4514 = vmatprep.mubr.msk.f32.mxu1 %vm5864_vm1, %v5863_v2  ;;  %v1633_v57 = vld [vmem:[%s7151_s5 + $0x38] sm:$0xff] }
 0x138   :  { %5279 = vmatprep.subr.bf16.mxu1 %v5865_v9 }
 0x13b   :  { %5281 = vmatpush3.bf16.msra.mxu1 %v5280_v58  ;;  %v6356_v58 = vpack.c.bf16 %v1658_v34, %v1655_v18  ;;  %v1745_v34 = vand.u32 4294901760, %v1744_v36 }
 0x13c   :  { %5282 = vmatprep.subr.bf16.mxu1 %v5865_v9 }
 0x13f   :  { %5284 = vmatpush3.bf16.msra.mxu1 %v5283_v4  ;;  %v1661_v4 = vand.u32 4294901760, %v1632_v56 }
 0x140   :  { %5285 = vmatprep.subr.bf16.mxu1 %v5865_v9 }
 0x143   :  { %5287 = vmatpush3.bf16.msra.mxu1 %v5286_v11  ;;  %v1664_v11 = vand.u32 4294901760, %v1633_v57 }
 0x144   :  { %5288 = vmatprep.subr.bf16.mxu1 %v5865_v9 }
 0x145   :  { %v6370_v32 = vpack.c.bf16 %v1664_v11, %v1661_v4 }
 0x147   :  { %5290 = vmatpush3.bf16.msra.mxu1 %v5289_v12  ;;  %v6359_v12 = vsub.f32 %v1632_v56, %v1661_v4  ;;  %v1750_v56 = vand.u32 4294901760, %v6331_v60 }
 0x148   :  { %5291 = vmatprep.subr.bf16.mxu1 %v5865_v9 }
 0x14b   :  { %5293 = vmatpush3.bf16.msra.mxu1 %v5292_v13  ;;  %v6361_v13 = vsub.f32 %v1633_v57, %v1664_v11  ;;  %v1757_v57 = vand.u32 4294901760, %v6333_v61 }
 0x14c   :  { %5294 = vmatprep.subr.bf16.mxu1 %v5865_v9 }
 0x14d   :  { %v6477_v11 = vpack.c.bf16 %v1757_v57, %v1750_v56 }
 0x14f   :  { %5296 = vmatpush3.bf16.msra.mxu1 %v5295_v20  ;;  %v1634_v20 = vld [vmem:[%s7151_s5 + $0x40] sm:$0xff] }
 0x150   :  { %5297 = vmatprep.subr.bf16.mxu1 %v5865_v9  ;;  %v1667_v42 = vand.u32 4294901760, %v1634_v20 }
 0x153   :  { %5299 = vmatpush3.bf16.msra.mxu1 %v5298_v24  ;;  %v1635_v24 = vld [vmem:[%s7151_s5 + $0x48] sm:$0xff] }
 0x154   :  { %5300 = vmatprep.subr.bf16.mxu1 %v5865_v9  ;;  %v1670_v44 = vand.u32 4294901760, %v1635_v24 }
 0x156   :  { %4515 = vmatmul.mubr.f32.vlgmr.msra.gmra.mrb[0].mxu1 %v600_v55  ;;  %v6375_v55 = vsub.f32 %v1635_v24, %v1670_v44  ;;  %v1758_v24 = vsub.f32 %v6333_v61, %v1757_v57 }
 0x157   :  { %5302 = vmatpush3.bf16.msra.mxu1 %v5980_v21  ;;  %4549 = vmatprep.mubr.msk.f32.mxu1 %vm5864_vm1, %v5863_v2 }
 0x158   :  { %5303 = vmatprep.subr.bf16.mxu1 %v5865_v9 }
 0x15b   :  { %5305 = vmatpush3.bf16.msra.mxu1 %v5992_v27 }
 0x15c   :  { %5306 = vmatprep.subr.bf16.mxu1 %v5865_v9 }
 0x15f   :  { %5308 = vmatpush3.bf16.msra.mxu1 %v6012_v45 }
 0x160   :  { %5309 = vmatprep.subr.bf16.mxu1 %v5865_v9 }
 0x163   :  { %5311 = vmatpush3.bf16.msra.mxu1 %v6023_v48 }
 0x164   :  { %5312 = vmatprep.subr.bf16.mxu1 %v5865_v9 }
 0x167   :  { %5314 = vmatpush3.bf16.msra.mxu1 %v6027_v49 }
 0x168   :  { %5315 = vmatprep.subr.bf16.mxu1 %v5865_v9 }
 0x16b   :  { %5317 = vmatpush3.bf16.msra.mxu1 %v6057_v54 }
 0x16c   :  { %5318 = vmatprep.subr.bf16.mxu1 %v5865_v9 }
 0x16f   :  { %5320 = vmatpush3.bf16.msra.mxu1 %v6067_v59 }
 0x170   :  { %5321 = vmatprep.subr.bf16.mxu1 %v5865_v9 }
 0x173   :  { %5323 = vmatpush3.bf16.msra.mxu1 %v6087_v7 }
 0x174   :  { %5324 = vmatprep.subr.bf16.mxu1 %v5865_v9 }
 0x176   :  { %4550 = vmatmul.mubr.f32.vlgmr.msra.gmra.mrb[0].mxu1 %v601_v35  ;;  %v6345_v35 = vsub.f32 %v1630_v3, %v1655_v18  ;;  %v1738_v18 = vand.u32 4294901760, %v1737_v26 }
 0x177   :  { %5326 = vmatpush3.bf16.msra.mxu1 %v5325_v19  ;;  %4584 = vmatprep.mubr.msk.f32.mxu1 %vm5864_vm1, %v5863_v2  ;;  %v1636_v19 = vld [vmem:[%s7151_s5 + $0x50] sm:$0xff] }
 0x178   :  { %5327 = vmatprep.subr.bf16.mxu1 %v5865_v9  ;;  %v6475_v4 = vpack.c.bf16 %v1745_v34, %v1738_v18 }
 0x17b   :  { %5329 = vmatpush3.bf16.msra.mxu1 %v5328_v30  ;;  %v1637_v30 = vld [vmem:[%s7151_s5 + $0x58] sm:$0xff] }
 0x17c   :  { %5330 = vmatprep.subr.bf16.mxu1 %v5865_v9 }
 0x17f   :  { %5332 = vmatpush3.bf16.msra.mxu1 %v5331_v22  ;;  %v6384_v22 = vpack.c.bf16 %v1670_v44, %v1667_v42  ;;  %v1759_v44 = vand.u32 4294901760, %v1758_v24 }
 0x180   :  { %5333 = vmatprep.subr.bf16.mxu1 %v5865_v9 }
 0x183   :  { %5335 = vmatpush3.bf16.msra.mxu1 %v5334_v23  ;;  %v1673_v23 = vand.u32 4294901760, %v1636_v19 }
 0x184   :  { %5336 = vmatprep.subr.bf16.mxu1 %v5865_v9 }
 0x187   :  { %5338 = vmatpush3.bf16.msra.mxu1 %v5337_v28  ;;  %v1676_v28 = vand.u32 4294901760, %v1637_v30 }
 0x188   :  { %5339 = vmatprep.subr.bf16.mxu1 %v5865_v9 }
 0x189   :  { %v6389_v33 = vsub.f32 %v1637_v30, %v1676_v28  ;;  %v1771_v30 = vand.u32 4294901760, %v6347_v41 }
 0x18b   :  { %5341 = vmatpush3.bf16.msra.mxu1 %v5340_v29  ;;  %v6387_v29 = vsub.f32 %v1636_v19, %v1673_v23  ;;  %v1764_v19 = vand.u32 4294901760, %v6345_v35  ;;  %v1813_v36 = vand.u32 4294901760, %v6389_v33 }
 0x18c   :  { %5342 = vmatprep.subr.bf16.mxu1 %v5865_v9 }
 0x18d   :  { %v1806_v26 = vand.u32 4294901760, %v6387_v29  ;;  %v1814_v57 = vsub.f32 %v6389_v33, %v1813_v36 }
 0x18f   :  { %5344 = vmatpush3.bf16.msra.mxu1 %v5343_v39  ;;  %v6392_v39 = vpack.c.bf16 %v1676_v28, %v1673_v23  ;;  %v6485_v28 = vpack.c.bf16 %v1771_v30, %v1764_v19  ;;  %v5502_v34 = vpack.c.bf16 %v1813_v36, %v1806_v26  ;;  %v1815_v24 = vand.u32 4294901760, %v1814_v57 }
 0x190   :  { %5345 = vmatprep.subr.bf16.mxu1 %v5865_v9 }
 0x193   :  { %5347 = vmatpush3.bf16.msra.mxu1 %v5346_v46 }
 0x194   :  { %5348 = vmatprep.subr.bf16.mxu1 %v5865_v9 }
 0x196   :  { %4585 = vmatmul.mubr.f32.vlgmr.msra.gmra.mrb[0].mxu1 %v6181_v50 }
 0x197   :  { %5350 = vmatpush3.bf16.msra.mxu1 %v5980_v21  ;;  %4619 = vmatprep.mubr.msk.f32.mxu1 %vm5864_vm1, %v5863_v2  ;;  %v1160_v21 = vld [vmem:[%s7150_s4] sm:$0xff] }
 0x198   :  { %5351 = vmatprep.subr.bf16.mxu1 %v5865_v9 }
 0x19b   :  { %5353 = vmatpush3.bf16.msra.mxu1 %v5992_v27  ;;  %v1161_v27 = vld [vmem:[%s7150_s4 + $0x8] sm:$0xff] }
 0x19c   :  { %5354 = vmatprep.subr.bf16.mxu1 %v5865_v9  ;;  %v1170_v47 = vand.u32 4294901760, %v1161_v27 }
 0x19f   :  { %5356 = vmatpush3.bf16.msra.mxu1 %v6012_v45  ;;  %v1167_v45 = vand.u32 4294901760, %v1160_v21 }
 0x1a0   :  { %5357 = vmatprep.subr.bf16.mxu1 %v5865_v9 }
 0x1a3   :  { %5359 = vmatpush3.bf16.msra.mxu1 %v6023_v48  ;;  %v6294_v48 = vpack.c.bf16 %v1170_v47, %v1167_v45 }
 0x1a4   :  { %5360 = vmatprep.subr.bf16.mxu1 %v5865_v9 }
 0x1a5   :  { %5374 = vmatpush3.bf16.msra.mxu0 %v6294_v48 }
 0x1a6   :  { %5375 = vmatprep.subr.bf16.mxu0 %v5865_v9 }
 0x1a7   :  { %5362 = vmatpush3.bf16.msra.mxu1 %v6027_v49  ;;  %v6296_v49 = vsub.f32 %v1160_v21, %v1167_v45 }
 0x1a8   :  { %5363 = vmatprep.subr.bf16.mxu1 %v5865_v9 }
 0x1ab   :  { %5365 = vmatpush3.bf16.msra.mxu1 %v6057_v54  ;;  %v6298_v54 = vsub.f32 %v1161_v27, %v1170_v47 }
 0x1ac   :  { %5366 = vmatprep.subr.bf16.mxu1 %v5865_v9 }
 0x1ad   :  { %v1253_v62 = vand.u32 4294901760, %v6298_v54 }
 0x1af   :  { %5368 = vmatpush3.bf16.msra.mxu1 %v6067_v59  ;;  %v1246_v59 = vand.u32 4294901760, %v6296_v49  ;;  %v1254_v0 = vsub.f32 %v6298_v54, %v1253_v62 }
 0x1b0   :  { %5369 = vmatprep.subr.bf16.mxu1 %v5865_v9 }
 0x1b1   :  { %v1247_v63 = vsub.f32 %v6296_v49, %v1246_v59  ;;  %v1255_v5 = vand.u32 4294901760, %v1254_v0  ;;  %v6310_v8 = vpack.c.bf16 %v1253_v62, %v1246_v59 }
 0x1b3   :  { %5371 = vmatpush3.bf16.msra.mxu1 %v6087_v7  ;;  %v1248_v1 = vand.u32 4294901760, %v1247_v63  ;;  %v5379_v7 = vpack.c.bf16 %v6298_v54, %v6296_v49  ;;  %v1639_v49 = vld [vmem:[%s7151_s5 + $0x68] sm:$0xff] }
 0x1b4   :  { %5390 = vmatprep.subr.bf16.mxu1 %v5865_v9  ;;  %v1682_v0 = vand.u32 4294901760, %v1639_v49 }
 0x1b5   :  { %v6306_v6 = vpack.c.bf16 %v1255_v5, %v1248_v1  ;;  %v1640_v5 = vld [vmem:[%s7151_s5 + $0x70] sm:$0xff] }
 0x1b6   :  { %4620 = vmatmul.mubr.f32.vlgmr.msra.gmra.mrb[0].mxu1 %v6181_v50  ;;  %v6373_v50 = vsub.f32 %v1634_v20, %v1667_v42  ;;  %v6467_v53 = vsub.f32 %v1639_v49, %v1682_v0  ;;  %v1751_v20 = vsub.f32 %v6331_v60, %v1750_v56  ;;  %v1807_v56 = vsub.f32 %v6387_v29, %v1806_v26 }
 0x1b7   :  { %4696 = vmatprep.mubr.msk.f32.mxu1 %vm5864_vm1, %v5863_v2  ;;  %5392 = vmatpush3.bf16.msra.mxu1 %v6324_v37  ;;  %v5448_v26 = vpack.c.bf16 %v6361_v13, %v6359_v12 }
 0x1b8   :  { %5393 = vmatprep.subr.bf16.mxu1 %v5865_v9  ;;  %v1752_v42 = vand.u32 4294901760, %v1751_v20  ;;  %v1808_v20 = vand.u32 4294901760, %v1807_v56  ;;  %v5451_v36 = vpack.c.bf16 %v6375_v55, %v6373_v50  ;;  %v5454_v56 = vpack.c.bf16 %v6389_v33, %v6387_v29 }
 0x1ba   :  { %v6483_v23 = vpack.c.bf16 %v1759_v44, %v1752_v42  ;;  %v1827_v44 = vand.u32 4294901760, %v6467_v53 }
 0x1bb   :  { %5395 = vmatpush3.bf16.msra.mxu1 %v6342_v17 }
 0x1bc   :  { %5396 = vmatprep.subr.bf16.mxu1 %v5865_v9 }
 0x1bf   :  { %5398 = vmatpush3.bf16.msra.mxu1 %v6356_v58 }
 0x1c0   :  { %5399 = vmatprep.subr.bf16.mxu1 %v5865_v9 }
 0x1c3   :  { %5401 = vmatpush3.bf16.msra.mxu1 %v6370_v32 }
 0x1c4   :  { %5402 = vmatprep.subr.bf16.mxu1 %v5865_v9 }
 0x1c7   :  { %5404 = vmatpush3.bf16.msra.mxu1 %v6384_v22 }
 0x1c8   :  { %5405 = vmatprep.subr.bf16.mxu1 %v5865_v9 }
 0x1cb   :  { %5407 = vmatpush3.bf16.msra.mxu1 %v6392_v39 }
 0x1cc   :  { %5408 = vmatprep.subr.bf16.mxu1 %v5865_v9 }
 0x289   :  { %v1155_v43 = vpop.f32.mrb[0].mxu1 }
 0x28a   :  { %v1159_v46 = vsub.f32 %v46_v40, %v1155_v43  ;;  %v4621_v21 = vpop.f32.mrb[1].mxu1  ;;  %v1765_v40 = vsub.f32 %v6345_v35, %v1764_v19  ;;  %v1772_v43 = vsub.f32 %v6347_v41, %v1771_v30  ;;  %v5430_v19 = vpack.c.bf16 %v1815_v24, %v1808_v20 }
 0x28c   :  { %v1164_v27 = vsel %vm1162_vm2, %v1159_v46, 0  ;;  %v1766_v46 = vand.u32 4294901760, %v1765_v40  ;;  %v1773_v21 = vand.u32 4294901760, %v1772_v43  ;;  %v1828_v43 = vsub.f32 %v6467_v53, %v1827_v44 }
 0x28d   :  { %v1233_v45 = vand.u32 4294901760, %v1164_v27 }
 0x28f   :  { %v1234_v47 = vsub.f32 %v1164_v27, %v1233_v45  ;;  %v1778_v27 = vand.u32 4294901760, %v6359_v12 }
 0x291   :  { %v1235_v59 = vand.u32 4294901760, %v1234_v47 }
 0x293   :  { %v1236_v62 = vsub.f32 %v1234_v47, %v1235_v59 }
 0x295   :  { %v1237_v63 = vand.u32 4294901760, %v1236_v62  ;;  %v1779_v62 = vsub.f32 %v6359_v12, %v1778_v27 }
 0x297   :  { %4627 = vmatmul.mubr.f32.vlgmr.msra.gmra.mrb[2].mxu0 %v1237_v63 }
 0x298   :  { %5377 = vmatpush3.bf16.msra.mxu0 %v6306_v6  ;;  %4633 = vmatprep.mubr.msk.f32.mxu0 %vm5864_vm1, %v5863_v2  ;;  %v1641_v6 = vld [vmem:[%s7151_s5 + $0x78] sm:$0xff] }
 0x299   :  { %5378 = vmatprep.subr.bf16.mxu0 %v5865_v9 }
 0x29f   :  { %4634 = vmatmul.mubr.f32.vlgmr.msra.gmra.mrb[2].mxu0 %v1233_v45 }
 0x2a0   :  { %5380 = vmatpush3.bf16.msra.mxu0 %v5379_v7  ;;  %4640 = vmatprep.mubr.msk.f32.mxu0 %vm5864_vm1, %v5863_v2  ;;  %v1685_v7 = vand.u32 4294901760, %v1640_v5 }
 0x2a1   :  { %5381 = vmatprep.subr.bf16.mxu0 %v5865_v9 }
 0x2a2   :  { %v6469_v3 = vsub.f32 %v1640_v5, %v1685_v7 }
 0x2a7   :  { %4641 = vmatmul.mubr.f32.vlgmr.msra.gmra.mrb[2].mxu0 %v1234_v47  ;;  %v6491_v47 = vpack.c.bf16 %v1773_v21, %v1766_v46  ;;  %v1829_v21 = vand.u32 4294901760, %v1828_v43 }
 0x2a8   :  { %5383 = vmatpush3.bf16.msra.mxu0 %v6294_v48  ;;  %4647 = vmatprep.mubr.msk.f32.mxu0 %vm5864_vm1, %v5863_v2 }
 0x2a9   :  { %5384 = vmatprep.subr.bf16.mxu0 %v5865_v9 }
 0x2af   :  { %4648 = vmatmul.mubr.f32.vlgmr.msra.gmra.mrb[2].mxu0 %v1235_v59 }
 0x2b0   :  { %5386 = vmatpush3.bf16.msra.mxu0 %v6310_v8  ;;  %4654 = vmatprep.mubr.msk.f32.mxu0 %vm5864_vm1, %v5863_v2  ;;  %v1688_v8 = vand.u32 4294901760, %v1641_v6 }
 0x2b1   :  { %5387 = vmatprep.subr.bf16.mxu0 %v5865_v9 }
 0x2b2   :  { %v6453_v10 = vpack.c.bf16 %v1688_v8, %v1685_v7  ;;  %v6471_v16 = vsub.f32 %v1641_v6, %v1688_v8 }
 0x2b7   :  { %4655 = vmatmul.mubr.f32.vlgmr.msra.gmra.mrb[2].mxu0 %v1233_v45 }
 0x2b8   :  { %5389 = vmatpush3.bf16.msra.mxu0 %v6294_v48  ;;  %4661 = vmatprep.mubr.msk.f32.mxu0 %vm5864_vm1, %v5863_v2  ;;  %v1638_v48 = vld [vmem:[%s7151_s5 + $0x60] sm:$0xff] }
 0x2b9   :  { %5462 = vmatprep.subr.bf16.mxu0 %v5865_v9  ;;  %v1679_v54 = vand.u32 4294901760, %v1638_v48 }
 0x2bb   :  { %v6441_v1 = vpack.c.bf16 %v1682_v0, %v1679_v54  ;;  %v6465_v52 = vsub.f32 %v1638_v48, %v1679_v54  ;;  %v1780_v48 = vand.u32 4294901760, %v1779_v62  ;;  %v1792_v54 = vand.u32 4294901760, %v6373_v50 }
 0x2bc   :  { %v1799_v0 = vand.u32 4294901760, %v6375_v55 }
 0x2bd   :  { %5410 = vmatpush3.bf16.msra.mxu1 %v6441_v1  ;;  %v1793_v7 = vsub.f32 %v6373_v50, %v1792_v54  ;;  %v1820_v42 = vand.u32 4294901760, %v6465_v52  ;;  %v5457_v57 = vpack.c.bf16 %v6467_v53, %v6465_v52  ;;  %v2736_v53 = vld [vmem:[%s7153_s7 + $0x10] sm:$0xff] }
 0x2be   :  { %5411 = vmatprep.subr.bf16.mxu1 %v5865_v9  ;;  %v6501_v6 = vpack.c.bf16 %v1799_v0, %v1792_v54  ;;  %v1800_v8 = vsub.f32 %v6375_v55, %v1799_v0 }
 0x2bf   :  { %4662 = vmatmul.mubr.f32.vlgmr.msra.gmra.mrb[2].mxu0 %v1233_v45  ;;  %v1785_v45 = vand.u32 4294901760, %v6361_v13  ;;  %v1794_v14 = vand.u32 4294901760, %v1793_v7  ;;  %v5505_v30 = vpack.c.bf16 %v1827_v44, %v1820_v42  ;;  %v1821_v40 = vsub.f32 %v6465_v52, %v1820_v42  ;;  %v2735_v52 = vld [vmem:[%s7153_s7 + $0x8] sm:$0xff] }
 0x2c0   :  { %5464 = vmatpush3.bf16.msra.mxu0 %v6324_v37  ;;  %4801 = vmatprep.mubr.msk.f32.mxu0 %vm5864_vm1, %v5863_v2  ;;  %v1801_v15 = vand.u32 4294901760, %v1800_v8  ;;  %v5439_v8 = vpack.c.bf16 %v6328_v51, %v6326_v38  ;;  %v5460_v38 = vpack.c.bf16 %v6471_v16, %v6469_v3 }
 0x2c1   :  { %5465 = vmatprep.subr.bf16.mxu0 %v5865_v9  ;;  %5413 = vmatpush3.bf16.msra.mxu1 %v6453_v10  ;;  %v6493_v59 = vpack.c.bf16 %v1785_v45, %v1778_v27  ;;  %v1786_v63 = vsub.f32 %v6361_v13, %v1785_v45  ;;  %v1822_v46 = vand.u32 4294901760, %v1821_v40  ;;  %v1834_v27 = vand.u32 4294901760, %v6469_v3 }
 0x2c2   :  { %5414 = vmatprep.subr.bf16.mxu1 %v5865_v9  ;;  %v5427_v18 = vpack.c.bf16 %v1801_v15, %v1794_v14  ;;  %v1841_v45 = vand.u32 4294901760, %v6471_v16  ;;  %v5442_v14 = vpack.c.bf16 %v6333_v61, %v6331_v60  ;;  %v5445_v15 = vpack.c.bf16 %v6347_v41, %v6345_v35 }
 0x2c3   :  { %v1787_v49 = vand.u32 4294901760, %v1786_v63  ;;  %v5433_v62 = vpack.c.bf16 %v1829_v21, %v1822_v46 }
 0x2c4   :  { %5467 = vmatpush3.bf16.msra.mxu0 %v6342_v17  ;;  %v5508_v63 = vpack.c.bf16 %v1841_v45, %v1834_v27 }
 0x2c5   :  { %5468 = vmatprep.subr.bf16.mxu0 %v5865_v9  ;;  %v6499_v5 = vpack.c.bf16 %v1787_v49, %v1780_v48  ;;  %v1835_v48 = vsub.f32 %v6469_v3, %v1834_v27  ;;  %v1842_v49 = vsub.f32 %v6471_v16, %v1841_v45  ;;  %v2750_v16 = vand.u32 4294901760, %v2735_v52  ;;  %v2740_v45 = vld [vmem:[%s7153_s7 + $0x30] sm:$0xff] }
 0x2c7   :  { %v1836_v54 = vand.u32 4294901760, %v1835_v48  ;;  %v1843_v0 = vand.u32 4294901760, %v1842_v49  ;;  %v2765_v48 = vand.u32 4294901760, %v2740_v45 }
 0x2c8   :  { %5470 = vmatpush3.bf16.msra.mxu0 %v6356_v58 }
 0x2c9   :  { %5471 = vmatprep.subr.bf16.mxu0 %v5865_v9  ;;  %v5436_v7 = vpack.c.bf16 %v1843_v0, %v1836_v54  ;;  %v2873_v0 = vsub.f32 %v2740_v45, %v2765_v48  ;;  %v3296_v45 = vld [vmem:[%s7154_s8 + $0x18] sm:$0xff] }
 0x2cc   :  { %5473 = vmatpush3.bf16.msra.mxu0 %v6370_v32 }
 0x2cd   :  { %5474 = vmatprep.subr.bf16.mxu0 %v5865_v9 }
 0x2d0   :  { %5476 = vmatpush3.bf16.msra.mxu0 %v6384_v22 }
 0x2d1   :  { %5477 = vmatprep.subr.bf16.mxu0 %v5865_v9 }
 0x2d4   :  { %5479 = vmatpush3.bf16.msra.mxu0 %v6392_v39 }
 0x2d5   :  { %5480 = vmatprep.subr.bf16.mxu0 %v5865_v9 }
 0x2d8   :  { %5482 = vmatpush3.bf16.msra.mxu0 %v6441_v1 }
 0x2d9   :  { %5483 = vmatprep.subr.bf16.mxu0 %v5865_v9 }
 0x2dc   :  { %5485 = vmatpush3.bf16.msra.mxu0 %v6453_v10 }
 0x2dd   :  { %5486 = vmatprep.subr.bf16.mxu0 %v5865_v9 }
 0x392   :  { %v1621_v51 = vpop.f32.mrb[2].mxu0 }
 0x393   :  { %v1625_v60 = vmul.f32 %v1621_v51, %v6178_v31  ;;  %v4663_v61 = vpop.f32.mrb[3].mxu0  ;;  %v2283_v31 = vld [vmem:[%s7152_s6] sm:$0xff] }
 0x395   :  { %v6534_v20 = vand.u32 4294901760, %v1625_v60 }
 0x397   :  { %v6537_v24 = vsub.f32 %v1625_v60, %v6534_v20 }
 0x399   :  { %v1725_v42 = vand.u32 4294901760, %v6537_v24 }
 0x39b   :  { %v1726_v44 = vsub.f32 %v6537_v24, %v1725_v42  ;;  %4802 = vmatmul.mubr.f32.vlgmr.msra.gmra.mrb[4].mxu0 %v1725_v42 }
 0x39c   :  { %5488 = vmatpush3.bf16.msra.mxu0 %v6461_v25  ;;  %4836 = vmatprep.mubr.msk.f32.mxu0 %vm5864_vm1, %v5863_v2  ;;  %v2734_v25 = vld [vmem:[%s7153_s7] sm:$0xff] }
 0x39d   :  { %5489 = vmatprep.subr.bf16.mxu0 %v5865_v9  ;;  %v1727_v40 = vand.u32 4294901760, %v1726_v44  ;;  %v2747_v3 = vand.u32 4294901760, %v2734_v25 }
 0x39f   :  { %4697 = vmatmul.mubr.f32.vlgmr.msra.gmra.mrb[2].mxu1 %v1727_v40  ;;  %v6666_v46 = vpack.c.bf16 %v2750_v16, %v2747_v3 }
 0x3a0   :  { %5416 = vmatpush3.bf16.msra.mxu1 %v6475_v4  ;;  %5491 = vmatpush3.bf16.msra.mxu0 %v6477_v11  ;;  %v2737_v4 = vld [vmem:[%s7153_s7 + $0x18] sm:$0xff]  ;;  %v2753_v11 = vand.u32 4294901760, %v2736_v53 }
 0x3a1   :  { %5417 = vmatprep.subr.bf16.mxu1 %v5865_v9  ;;  %5492 = vmatprep.subr.bf16.mxu0 %v5865_v9 }
 0x3a2   :  { %4731 = vmatprep.mubr.msk.f32.mxu1 %vm5864_vm1, %v5863_v2 }
 0x3a4   :  { %5419 = vmatpush3.bf16.msra.mxu1 %v6483_v23  ;;  %5494 = vmatpush3.bf16.msra.mxu0 %v6485_v28  ;;  %v2756_v23 = vand.u32 4294901760, %v2737_v4  ;;  %v2831_v28 = vsub.f32 %v2734_v25, %v2747_v3 }
 0x3a5   :  { %5420 = vmatprep.subr.bf16.mxu1 %v5865_v9  ;;  %5495 = vmatprep.subr.bf16.mxu0 %v5865_v9 }
 0x3a6   :  { %v6676_v54 = vpack.c.bf16 %v2756_v23, %v2753_v11 }
 0x3a8   :  { %5422 = vmatpush3.bf16.msra.mxu1 %v6491_v47  ;;  %5497 = vmatpush3.bf16.msra.mxu0 %v6493_v59  ;;  %v2838_v47 = vsub.f32 %v2735_v52, %v2750_v16  ;;  %v2845_v59 = vsub.f32 %v2736_v53, %v2753_v11  ;;  %v48_v16 = vld [vmem:[%s7146_s0] sm:$0x3] }
 0x3a9   :  { %5423 = vmatprep.subr.bf16.mxu1 %v5865_v9  ;;  %5498 = vmatprep.subr.bf16.mxu0 %v5865_v9 }
 0x3ac   :  { %5425 = vmatpush3.bf16.msra.mxu1 %v6499_v5  ;;  %5500 = vmatpush3.bf16.msra.mxu0 %v6501_v6  ;;  %v2852_v5 = vsub.f32 %v2737_v4, %v2756_v23  ;;  %v5559_v6 = vpack.c.bf16 %v2838_v47, %v2831_v28 }
 0x3ad   :  { %5426 = vmatprep.subr.bf16.mxu1 %v5865_v9  ;;  %5501 = vmatprep.subr.bf16.mxu0 %v5865_v9 }
 0x3b0   :  { %5428 = vmatpush3.bf16.msra.mxu1 %v5427_v18  ;;  %5503 = vmatpush3.bf16.msra.mxu0 %v5502_v34  ;;  %v5562_v18 = vpack.c.bf16 %v2852_v5, %v2845_v59  ;;  %v2738_v34 = vld [vmem:[%s7153_s7 + $0x20] sm:$0xff] }
 0x3b1   :  { %5429 = vmatprep.subr.bf16.mxu1 %v5865_v9  ;;  %5504 = vmatprep.subr.bf16.mxu0 %v5865_v9 }
 0x3b4   :  { %5431 = vmatpush3.bf16.msra.mxu1 %v5430_v19  ;;  %5506 = vmatpush3.bf16.msra.mxu0 %v5505_v30  ;;  %v2739_v19 = vld [vmem:[%s7153_s7 + $0x28] sm:$0xff]  ;;  %v2759_v30 = vand.u32 4294901760, %v2738_v34 }
 0x3b5   :  { %5432 = vmatprep.subr.bf16.mxu1 %v5865_v9  ;;  %5507 = vmatprep.subr.bf16.mxu0 %v5865_v9  ;;  %v2762_v43 = vand.u32 4294901760, %v2739_v19 }
 0x3b6   :  { %v2859_v21 = vsub.f32 %v2738_v34, %v2759_v30 }
 0x3b7   :  { %v2866_v27 = vsub.f32 %v2739_v19, %v2762_v43  ;;  %v3293_v19 = vld [vmem:[%s7154_s8] sm:$0xff] }
 0x3b8   :  { %5434 = vmatpush3.bf16.msra.mxu1 %v5433_v62  ;;  %5509 = vmatpush3.bf16.msra.mxu0 %v5508_v63  ;;  %v2741_v62 = vld [vmem:[%s7153_s7 + $0x38] sm:$0xff]  ;;  %v2860_v42 = vand.u32 4294901760, %v2859_v21 }
 0x3b9   :  { %5435 = vmatprep.subr.bf16.mxu1 %v5865_v9  ;;  %5510 = vmatprep.subr.bf16.mxu0 %v5865_v9  ;;  %v5565_v63 = vpack.c.bf16 %v2866_v27, %v2859_v21  ;;  %v2768_v49 = vand.u32 4294901760, %v2741_v62  ;;  %v2867_v44 = vand.u32 4294901760, %v2866_v27 }
 0x3bb   :  { %4837 = vmatmul.mubr.f32.vlgmr.msra.gmra.mrb[4].mxu0 %v6534_v20 }
 0x3bc   :  { %5437 = vmatpush3.bf16.msra.mxu1 %v5436_v7  ;;  %5512 = vmatpush3.bf16.msra.mxu0 %v6324_v37  ;;  %v2288_v37 = vand.u32 4294901760, %v2283_v31  ;;  %v2880_v7 = vsub.f32 %v2741_v62, %v2768_v49 }
 0x3bd   :  { %5438 = vmatprep.subr.bf16.mxu1 %v5865_v9  ;;  %5513 = vmatprep.subr.bf16.mxu0 %v5865_v9 }
 0x3be   :  { %4871 = vmatprep.mubr.msk.f32.mxu0 %vm5864_vm1, %v5863_v2 }
 0x3bf   :  { %4732 = vmatmul.mubr.f32.vlgmr.msra.gmra.mrb[2].mxu1 %v6534_v20 }
 0x3c0   :  { %5440 = vmatpush3.bf16.msra.mxu1 %v5439_v8  ;;  %5515 = vmatpush3.bf16.msra.mxu0 %v6342_v17  ;;  %v2365_v17 = vsub.f32 %v2283_v31, %v2288_v37  ;;  %v5568_v8 = vpack.c.bf16 %v2880_v7, %v2873_v0 }
 0x3c1   :  { %5441 = vmatprep.subr.bf16.mxu1 %v5865_v9  ;;  %5516 = vmatprep.subr.bf16.mxu0 %v5865_v9 }
 0x3c2   :  { %4766 = vmatprep.mubr.msk.f32.mxu1 %vm5864_vm1, %v5863_v2  ;;  %v2366_v35 = vand.u32 4294901760, %v2365_v17 }
 0x3c4   :  { %5443 = vmatpush3.bf16.msra.mxu1 %v5442_v14  ;;  %5518 = vmatpush3.bf16.msra.mxu0 %v6356_v58  ;;  %v2367_v41 = vsub.f32 %v2365_v17, %v2366_v35  ;;  %v6681_v14 = vpack.c.bf16 %v2762_v43, %v2759_v30  ;;  %v3294_v30 = vld [vmem:[%s7154_s8 + $0x8] sm:$0xff]  ;;  %v3310_v43 = vand.u32 4294901760, %v3293_v19 }
 0x3c5   :  { %5444 = vmatprep.subr.bf16.mxu1 %v5865_v9  ;;  %5519 = vmatprep.subr.bf16.mxu0 %v5865_v9 }
 0x3c6   :  { %v2368_v58 = vand.u32 4294901760, %v2367_v41 }
 0x3c8   :  { %5446 = vmatpush3.bf16.msra.mxu1 %v5445_v15  ;;  %5521 = vmatpush3.bf16.msra.mxu0 %v6370_v32  ;;  %v2832_v15 = vand.u32 4294901760, %v2831_v28 }
 0x3c9   :  { %5447 = vmatprep.subr.bf16.mxu1 %v5865_v9  ;;  %5522 = vmatprep.subr.bf16.mxu0 %v5865_v9 }
 0x3ca   :  { %v2833_v51 = vsub.f32 %v2831_v28, %v2832_v15 }
 0x3cc   :  { %5449 = vmatpush3.bf16.msra.mxu1 %v5448_v26  ;;  %5524 = vmatpush3.bf16.msra.mxu0 %v6384_v22  ;;  %v2839_v26 = vand.u32 4294901760, %v2838_v47 }
 0x3cd   :  { %5450 = vmatprep.subr.bf16.mxu1 %v5865_v9  ;;  %5525 = vmatprep.subr.bf16.mxu0 %v5865_v9 }
 0x3ce   :  { %v2840_v60 = vsub.f32 %v2838_v47, %v2839_v26 }
 0x3d0   :  { %5452 = vmatpush3.bf16.msra.mxu1 %v5451_v36  ;;  %5527 = vmatpush3.bf16.msra.mxu0 %v6392_v39  ;;  %v5583_v36 = vpack.c.bf16 %v2839_v26, %v2832_v15  ;;  %v6747_v26 = vld [vmem:[%s7154_s8 + $0x30] sm:$0xff] }
 0x3d1   :  { %5453 = vmatprep.subr.bf16.mxu1 %v5865_v9  ;;  %5528 = vmatprep.subr.bf16.mxu0 %v5865_v9 }
 0x3d4   :  { %5455 = vmatpush3.bf16.msra.mxu1 %v5454_v56  ;;  %5530 = vmatpush3.bf16.msra.mxu0 %v6441_v1  ;;  %v6686_v56 = vpack.c.bf16 %v2768_v49, %v2765_v48  ;;  %v3319_v48 = vand.u32 4294901760, %v3296_v45  ;;  %v3297_v49 = vld [vmem:[%s7154_s8 + $0x20] sm:$0xff] }
 0x3d5   :  { %5456 = vmatprep.subr.bf16.mxu1 %v5865_v9  ;;  %5531 = vmatprep.subr.bf16.mxu0 %v5865_v9 }
 0x3d8   :  { %5458 = vmatpush3.bf16.msra.mxu1 %v5457_v57  ;;  %5533 = vmatpush3.bf16.msra.mxu0 %v6453_v10  ;;  %v2846_v57 = vand.u32 4294901760, %v2845_v59 }
 0x3d9   :  { %5459 = vmatprep.subr.bf16.mxu1 %v5865_v9  ;;  %4874 = vmatprep.subr.mxu0 %v5863_v2 }
 0x3da   :  { %v2847_v40 = vsub.f32 %v2845_v59, %v2846_v57 }
 0x3db   :  { %4872 = vmatmul.mubr.f32.vlgmr.msra.gmra.mrb[4].mxu0 %v6534_v20  ;;  %v2834_v20 = vand.u32 4294901760, %v2833_v51 }
 0x3dc   :  { %5461 = vmatpush3.bf16.msra.mxu1 %v5460_v38  ;;  %4876 = vmatprep.mubr.msk.f32.mxu0 %vm5864_vm1, %v5863_v2  ;;  %v2853_v38 = vand.u32 4294901760, %v2852_v5 }
 0x3dd   :  { %4879 = vmatprep.subr.mxu1 %v5863_v2  ;;  %4875 = vmatpush3.msra.mxu0 %v2288_v37 }
 0x3de   :  { %5558 = vmatprep.subr.bf16.mxu0 %v5865_v9  ;;  %v5586_v61 = vpack.c.bf16 %v2853_v38, %v2846_v57  ;;  %v2854_v31 = vsub.f32 %v2852_v5, %v2853_v38  ;;  %v3328_v38 = vand.u32 4294901760, %v6747_v26 }
 0x3df   :  { %4767 = vmatmul.mubr.f32.vlgmr.msra.gmra.mrb[2].mxu1 %v6537_v24  ;;  %v2841_v24 = vand.u32 4294901760, %v2840_v60  ;;  %v6765_v60 = vld [vmem:[%s7154_s8 + $0x40] sm:$0xff] }
 0x3e0   :  { %4881 = vmatprep.mubr.msk.f32.mxu1 %vm5864_vm1, %v5863_v2  ;;  %4880 = vmatpush3.msra.mxu1 %v2368_v58  ;;  %v2855_v41 = vand.u32 4294901760, %v2854_v31  ;;  %v5813_v31 = vld [vmem:[%s7155_s9] sm:$0x3] }
 0x3e1   :  { %4884 = vmatprep.subr.mxu1 %v5863_v2 }
 0x4ae   :  { %v2279_v12 = vpop.f32.mrb[4].mxu0 }
 0x4af   :  { %v4873_v13 = vpop.f32.mrb[5].mxu0 }
 0x4b0   :  { %v2881_v13 = vand.u32 4294901760, %v2880_v7 }
 0x4b2   :  { %v1984_v32 = vpop.f32.mrb[2].mxu1 }
 0x4b3   :  { %v5750_v50 = vadd.f32 %v2279_v12, %v1984_v32  ;;  %v4768_v55 = vpop.f32.mrb[3].mxu1  ;;  %v2874_v12 = vand.u32 4294901760, %v2873_v0  ;;  %v2861_v32 = vsub.f32 %v2859_v21, %v2860_v42  ;;  %v3313_v21 = vand.u32 4294901760, %v3294_v30 }
 0x4b5   :  { %v2285_v22 = vsel %vm51_vm0, %v5750_v50, 0  ;;  %v2868_v50 = vsub.f32 %v2866_v27, %v2867_v44  ;;  %v5592_v55 = vpack.c.bf16 %v2881_v13, %v2874_v12  ;;  %v3295_v27 = vld [vmem:[%s7154_s8 + $0x10] sm:$0xff]  ;;  %v6724_v62 = vpack.c.bf16 %v3313_v21, %v3310_v43 }
 0x4b6   :  { %v2353_v29 = vand.u32 4294901760, %v2285_v22 }
 0x4b8   :  { %v2354_v33 = vsub.f32 %v2285_v22, %v2353_v29  ;;  %4882 = vmatmul.mubr.f32.vlgmr.msra.gmra.mrb[4].mxu1 %v2353_v29  ;;  %v2862_v22 = vand.u32 4294901760, %v2861_v32  ;;  %v6819_v32 = vld [vmem:[%s7154_s8 + $0x68] sm:$0xff] }
 0x4b9   :  { %4885 = vmatpush3.msra.mxu1 %v2365_v17  ;;  %4886 = vmatprep.mubr.msk.f32.mxu1 %vm5864_vm1, %v5863_v2  ;;  %v5589_v17 = vpack.c.bf16 %v2867_v44, %v2860_v42  ;;  %v6787_v44 = vld [vmem:[%s7154_s8 + $0x50] sm:$0xff] }
 0x4ba   :  { %v2355_v39 = vand.u32 4294901760, %v2354_v33  ;;  %4889 = vmatprep.subr.mxu1 %v5863_v2 }
 0x4bc   :  { %v2356_v1 = vsub.f32 %v2354_v33, %v2355_v39 }
 0x4be   :  { %v2357_v10 = vand.u32 4294901760, %v2356_v1 }
 0x4c0   :  { %4877 = vmatmul.mubr.f32.vlgmr.msra.gmra.mrb[6].mxu0 %v2357_v10  ;;  %4887 = vmatmul.mubr.f32.vlgmr.msra.gmra.mrb[4].mxu1 %v2354_v33  ;;  %v2875_v33 = vsub.f32 %v2873_v0, %v2874_v12  ;;  %v6733_v0 = vld [vmem:[%s7154_s8 + $0x28] sm:$0xff] }
 0x4c1   :  { %4890 = vmatpush3.msra.mxu1 %v2288_v37  ;;  %4891 = vmatprep.mubr.msk.f32.mxu1 %vm5864_vm1, %v5863_v2  ;;  %v3325_v15 = vand.u32 4294901760, %v6733_v0 }
 0x4c2   :  { %4894 = vmatprep.subr.mxu1 %v5863_v2  ;;  %4958 = vmatprep.mubr.msk.f32.mxu0 %vm5864_vm1, %v5863_v2  ;;  %v2876_v10 = vand.u32 4294901760, %v2875_v33 }
 0x4c3   :  { %5560 = vmatpush3.bf16.msra.mxu0 %v5559_v6 }
 0x4c4   :  { %5561 = vmatprep.subr.bf16.mxu0 %v5865_v9 }
 0x4c7   :  { %5563 = vmatpush3.bf16.msra.mxu0 %v5562_v18 }
 0x4c8   :  { %4892 = vmatmul.mubr.f32.vlgmr.msra.gmra.mrb[4].mxu1 %v2355_v39  ;;  %5564 = vmatprep.subr.bf16.mxu0 %v5865_v9  ;;  %v2882_v39 = vsub.f32 %v2880_v7, %v2881_v13  ;;  %v6814_v13 = vld [vmem:[%s7154_s8 + $0x60] sm:$0xff] }
 0x4c9   :  { %4895 = vmatpush3.msra.mxu1 %v2366_v35  ;;  %4896 = vmatprep.mubr.msk.f32.mxu1 %vm5864_vm1, %v5863_v2  ;;  %v2848_v35 = vand.u32 4294901760, %v2847_v40  ;;  %v6792_v40 = vld [vmem:[%s7154_s8 + $0x58] sm:$0xff] }
 0x4ca   :  { %4899 = vmatprep.subr.mxu1 %v5863_v2  ;;  %v2883_v25 = vand.u32 4294901760, %v2882_v39  ;;  %v3343_v12 = vand.u32 4294901760, %v6792_v40 }
 0x4cb   :  { %5566 = vmatpush3.bf16.msra.mxu0 %v5565_v63  ;;  %v5550_v58 = vpack.c.bf16 %v2855_v41, %v2848_v35  ;;  %v3316_v63 = vand.u32 4294901760, %v3295_v27  ;;  %v6802_v35 = vsub.f32 %v3294_v30, %v3313_v21 }
 0x4cc   :  { %5567 = vmatprep.subr.bf16.mxu0 %v5865_v9  ;;  %v5556_v52 = vpack.c.bf16 %v2883_v25, %v2876_v10  ;;  %v3349_v10 = vand.u32 4294901760, %v6819_v32  ;;  %v6845_v25 = vld [vmem:[%s7154_s8 + $0x70] sm:$0xff] }
 0x4cd   :  { %v6738_v7 = vpack.c.bf16 %v3319_v48, %v3316_v63  ;;  %v3410_v33 = vand.u32 4294901760, %v6802_v35 }
 0x4cf   :  { %5569 = vmatpush3.bf16.msra.mxu0 %v5568_v8  ;;  %v3322_v8 = vand.u32 4294901760, %v3297_v49 }
 0x4d0   :  { %4897 = vmatmul.mubr.f32.vlgmr.msra.gmra.mrb[4].mxu1 %v2353_v29  ;;  %5582 = vmatprep.subr.bf16.mxu0 %v5865_v9 }
 0x4d1   :  { %4900 = vmatpush3.msra.mxu1 %v2288_v37  ;;  %4901 = vmatprep.mubr.msk.f32.mxu1 %vm5864_vm1, %v5863_v2  ;;  %v5547_v37 = vpack.c.bf16 %v2841_v24, %v2834_v20  ;;  %v6756_v57 = vpack.c.bf16 %v3325_v15, %v3322_v8  ;;  %v3334_v24 = vand.u32 4294901760, %v6765_v60 }
 0x4d2   :  { %5534 = vmatprep.subr.bf16.mxu1 %v5865_v9 }
 0x4d8   :  { %4902 = vmatmul.mubr.f32.vlgmr.msra.gmra.mrb[4].mxu1 %v2353_v29  ;;  %v2869_v29 = vand.u32 4294901760, %v2868_v50 }
 0x4d9   :  { %4920 = vmatprep.mubr.msk.f32.mxu1 %vm5864_vm1, %v5863_v2  ;;  %5536 = vmatpush3.bf16.msra.mxu1 %v6666_v46 }
 0x4da   :  { %5537 = vmatprep.subr.bf16.mxu1 %v5865_v9  ;;  %v5553_v1 = vpack.c.bf16 %v2869_v29, %v2862_v22  ;;  %v6827_v22 = vsub.f32 %v3296_v45, %v3319_v48  ;;  %v6910_v48 = vsub.f32 %v6765_v60, %v3334_v24 }
 0x4dd   :  { %5539 = vmatpush3.bf16.msra.mxu1 %v6676_v54 }
 0x4de   :  { %5540 = vmatprep.subr.bf16.mxu1 %v5865_v9 }
 0x4e1   :  { %5542 = vmatpush3.bf16.msra.mxu1 %v6681_v14 }
 0x4e2   :  { %5543 = vmatprep.subr.bf16.mxu1 %v5865_v9 }
 0x4e5   :  { %5545 = vmatpush3.bf16.msra.mxu1 %v6686_v56 }
 0x4e6   :  { %5546 = vmatprep.subr.bf16.mxu1 %v5865_v9 }
 0x593   :  { %v2359_v53 = vpop.f32.mrb[6].mxu0 }
 0x594   :  { %v4878_v3 = vpop.f32.mrb[7].mxu0 }
 0x5ab   :  { %v2729_v4 = vpop.f32.mrb[4].mxu1 }
 0x5ac   :  { %v5751_v11 = vadd.f32 %v2729_v4, %v2359_v53  ;;  %v4903_v23 = vpop.f32.mrb[5].mxu1  ;;  %v6852_v53 = vsub.f32 %v3297_v49, %v3322_v8  ;;  %v3411_v4 = vsub.f32 %v6802_v35, %v3410_v33 }
 0x5ad   :  { %v3424_v23 = vand.u32 4294901760, %v6827_v22 }
 0x5ae   :  { %v2733_v28 = vmul.f32 %v5751_v11, %v48_v16  ;;  %v3412_v21 = vand.u32 4294901760, %v3411_v4  ;;  %v3431_v45 = vand.u32 4294901760, %v6852_v53 }
 0x5b0   :  { %v2744_v47 = vsel %vm2742_vm3, %v2733_v28, 0  ;;  %v6866_v28 = vsub.f32 %v6733_v0, %v3325_v15 }
 0x5b1   :  { %v6693_v59 = vand.u32 4294901760, %v2744_v47 }
 0x5b3   :  { %v6696_v5 = vsub.f32 %v2744_v47, %v6693_v59 }
 0x5b5   :  { %4959 = vmatmul.mubr.f32.vlgmr.msra.gmra.mrb[8].mxu0 %v6696_v5  ;;  %v2821_v6 = vand.u32 4294901760, %v6696_v5 }
 0x5b6   :  { %5584 = vmatpush3.bf16.msra.mxu0 %v5583_v36  ;;  %4996 = vmatprep.mubr.msk.f32.mxu0 %vm5864_vm1, %v5863_v2  ;;  %v6752_v36 = vld [vmem:[%s7154_s8 + $0x38] sm:$0xff] }
 0x5b7   :  { %5585 = vmatprep.subr.bf16.mxu0 %v5865_v9  ;;  %v2822_v18 = vsub.f32 %v6696_v5, %v2821_v6  ;;  %v3331_v51 = vand.u32 4294901760, %v6752_v36 }
 0x5b9   :  { %v2823_v34 = vand.u32 4294901760, %v2822_v18  ;;  %v6779_v20 = vpack.c.bf16 %v3331_v51, %v3328_v38  ;;  %v3352_v18 = vand.u32 4294901760, %v6845_v25 }
 0x5ba   :  { %5587 = vmatpush3.bf16.msra.mxu0 %v5586_v61  ;;  %v6770_v61 = vld [vmem:[%s7154_s8 + $0x48] sm:$0xff] }
 0x5bb   :  { %4921 = vmatmul.mubr.f32.vlgmr.msra.gmra.mrb[6].mxu1 %v2823_v34  ;;  %5588 = vmatprep.subr.bf16.mxu0 %v5865_v9  ;;  %v3337_v42 = vand.u32 4294901760, %v6770_v61 }
 0x5bc   :  { %5548 = vmatpush3.bf16.msra.mxu1 %v5547_v37  ;;  %4939 = vmatprep.mubr.msk.f32.mxu1 %vm5864_vm1, %v5863_v2  ;;  %v6797_v37 = vand.u32 4294901760, %v5813_v31 }
 0x5bd   :  { %5549 = vmatprep.subr.bf16.mxu1 %v5865_v9  ;;  %v6806_v41 = vpack.c.bf16 %v3337_v42, %v3334_v24  ;;  %v6913_v49 = vsub.f32 %v6770_v61, %v3337_v42  ;;  %v6936_v61 = vsub.f32 %v6792_v40, %v3343_v12  ;;  %v3459_v42 = vand.u32 4294901760, %v6910_v48 }
 0x5be   :  { %5590 = vmatpush3.bf16.msra.mxu0 %v5589_v17  ;;  %v6800_v17 = vsub.f32 %v3293_v19, %v3310_v43  ;;  %v6822_v50 = vsub.f32 %v5813_v31, %v6797_v37  ;;  %v6881_v19 = vsub.f32 %v6747_v26, %v3328_v38 }
 0x5bf   :  { %5591 = vmatprep.subr.bf16.mxu0 %v5865_v9  ;;  %v3466_v31 = vand.u32 4294901760, %v6913_v49 }
 0x5c0   :  { %5551 = vmatpush3.bf16.msra.mxu1 %v5550_v58  ;;  %v3340_v58 = vand.u32 4294901760, %v6787_v44  ;;  %v3403_v29 = vand.u32 4294901760, %v6800_v17  ;;  %v3392_v3 = vand.u32 4294901760, %v6822_v50 }
 0x5c1   :  { %5552 = vmatprep.subr.bf16.mxu1 %v5865_v9 }
 0x5c2   :  { %5593 = vmatpush3.bf16.msra.mxu0 %v5592_v55  ;;  %v6825_v55 = vsub.f32 %v3295_v27, %v3316_v63  ;;  %v6837_v39 = vpack.c.bf16 %v3343_v12, %v3340_v58  ;;  %v3404_v16 = vsub.f32 %v6800_v17, %v3403_v29  ;;  %v3393_v30 = vsub.f32 %v6822_v50, %v3392_v3 }
 0x5c3   :  { %5606 = vmatprep.subr.bf16.mxu0 %v5865_v9  ;;  %v3438_v63 = vand.u32 4294901760, %v6866_v28  ;;  %v6930_v60 = vsub.f32 %v6787_v44, %v3340_v58  ;;  %v3460_v58 = vsub.f32 %v6910_v48, %v3459_v42  ;;  %v3467_v12 = vsub.f32 %v6913_v49, %v3466_v31 }
 0x5c4   :  { %5554 = vmatpush3.bf16.msra.mxu1 %v5553_v1  ;;  %v3346_v1 = vand.u32 4294901760, %v6814_v13  ;;  %v3417_v11 = vand.u32 4294901760, %v6825_v55  ;;  %v3405_v43 = vand.u32 4294901760, %v3404_v16  ;;  %v3394_v0 = vand.u32 4294901760, %v3393_v30 }
 0x5c5   :  { %4997 = vmatmul.mubr.f32.vlgmr.msra.gmra.mrb[10].mxu0 %v6693_v59  ;;  %5555 = vmatprep.subr.bf16.mxu1 %v5865_v9  ;;  %v3439_v38 = vsub.f32 %v6866_v28, %v3438_v63  ;;  %v3473_v30 = vand.u32 4294901760, %v6930_v60 }
 0x5c6   :  { %5608 = vmatpush3.bf16.msra.mxu0 %v6724_v62  ;;  %5050 = vmatprep.mubr.msk.f32.mxu0 %vm5864_vm1, %v5863_v2  ;;  %v6873_v47 = vpack.c.bf16 %v3349_v10, %v3346_v1  ;;  %v3418_v5 = vsub.f32 %v6825_v55, %v3417_v11  ;;  %v5631_v8 = vpack.c.bf16 %v3412_v21, %v3405_v43  ;;  %v3480_v43 = vand.u32 4294901760, %v6936_v61 }
 0x5c7   :  { %5609 = vmatprep.subr.bf16.mxu0 %v5865_v9  ;;  %v3440_v4 = vand.u32 4294901760, %v3439_v38  ;;  %v6953_v40 = vsub.f32 %v6814_v13, %v3346_v1  ;;  %v6967_v21 = vsub.f32 %v6819_v32, %v3349_v10 }
 0x5c8   :  { %5557 = vmatpush3.bf16.msra.mxu1 %v5556_v52  ;;  %v6850_v52 = vld [vmem:[%s7154_s8 + $0x78] sm:$0xff]  ;;  %v3419_v15 = vand.u32 4294901760, %v3418_v5  ;;  %v6972_v5 = vsub.f32 %v6845_v25, %v3352_v18  ;;  %v3481_v32 = vsub.f32 %v6936_v61, %v3480_v43 }
 0x5c9   :  { %5570 = vmatprep.subr.bf16.mxu1 %v5865_v9  ;;  %v3355_v34 = vand.u32 4294901760, %v6850_v52  ;;  %v3487_v25 = vand.u32 4294901760, %v6953_v40 }
 0x5ca   :  { %5611 = vmatpush3.bf16.msra.mxu0 %v6738_v7 }
 0x5cb   :  { %4940 = vmatmul.mubr.f32.vlgmr.msra.gmra.mrb[8].mxu1 %v6693_v59  ;;  %5612 = vmatprep.subr.bf16.mxu0 %v5865_v9  ;;  %v6904_v27 = vpack.c.bf16 %v3355_v34, %v3352_v18  ;;  %v6983_v10 = vsub.f32 %v6850_v52, %v3355_v34  ;;  %v3494_v18 = vand.u32 4294901760, %v6967_v21  ;;  %v3488_v38 = vsub.f32 %v6953_v40, %v3487_v25 }
 0x5cc   :  { %5572 = vmatpush3.bf16.msra.mxu1 %v6666_v46  ;;  %4977 = vmatprep.mubr.msk.f32.mxu1 %vm5864_vm1, %v5863_v2  ;;  %v3501_v34 = vand.u32 4294901760, %v6972_v5 }
 0x5cd   :  { %5573 = vmatprep.subr.bf16.mxu1 %v5865_v9  ;;  %v3495_v52 = vsub.f32 %v6967_v21, %v3494_v18 }
 0x5ce   :  { %5614 = vmatpush3.bf16.msra.mxu0 %v6756_v57 }
 0x5cf   :  { %5615 = vmatprep.subr.bf16.mxu0 %v5865_v9 }
 0x5d0   :  { %5575 = vmatpush3.bf16.msra.mxu1 %v6676_v54 }
 0x5d1   :  { %5576 = vmatprep.subr.bf16.mxu1 %v5865_v9 }
 0x5d2   :  { %5617 = vmatpush3.bf16.msra.mxu0 %v6779_v20 }
 0x5d3   :  { %5618 = vmatprep.subr.bf16.mxu0 %v5865_v9 }
 0x5d4   :  { %5578 = vmatpush3.bf16.msra.mxu1 %v6681_v14 }
 0x5d5   :  { %5579 = vmatprep.subr.bf16.mxu1 %v5865_v9 }
 0x5d6   :  { %5620 = vmatpush3.bf16.msra.mxu0 %v6806_v41 }
 0x5d7   :  { %5621 = vmatprep.subr.bf16.mxu0 %v5865_v9 }
 0x5d8   :  { %5581 = vmatpush3.bf16.msra.mxu1 %v6686_v56 }
 0x5d9   :  { %5594 = vmatprep.subr.bf16.mxu1 %v5865_v9 }
 0x5da   :  { %5623 = vmatpush3.bf16.msra.mxu0 %v6837_v39 }
 0x5db   :  { %4978 = vmatmul.mubr.f32.vlgmr.msra.gmra.mrb[10].mxu1 %v2821_v6  ;;  %5624 = vmatprep.subr.bf16.mxu0 %v5865_v9  ;;  %v3425_v6 = vsub.f32 %v6827_v22, %v3424_v23 }
 0x5dc   :  { %5596 = vmatpush3.bf16.msra.mxu1 %v6666_v46  ;;  %5015 = vmatprep.mubr.msk.f32.mxu1 %vm5864_vm1, %v5863_v2  ;;  %v6899_v46 = vsub.f32 %v6752_v36, %v3331_v51  ;;  %v3432_v36 = vsub.f32 %v6852_v53, %v3431_v45  ;;  %v3445_v51 = vand.u32 4294901760, %v6881_v19 }
 0x5dd   :  { %5597 = vmatprep.subr.bf16.mxu1 %v5865_v9  ;;  %v3426_v26 = vand.u32 4294901760, %v3425_v6  ;;  %v3461_v6 = vand.u32 4294901760, %v3460_v58 }
 0x5de   :  { %5626 = vmatpush3.bf16.msra.mxu0 %v6873_v47  ;;  %v3433_v16 = vand.u32 4294901760, %v3432_v36  ;;  %v3482_v36 = vand.u32 4294901760, %v3481_v32  ;;  %v5664_v32 = vpack.c.bf16 %v6899_v46, %v6881_v19 }
 0x5df   :  { %5627 = vmatprep.subr.bf16.mxu0 %v5865_v9  ;;  %v5634_v24 = vpack.c.bf16 %v3426_v26, %v3419_v15 }
 0x5e0   :  { %5599 = vmatpush3.bf16.msra.mxu1 %v6676_v54  ;;  %v3452_v54 = vand.u32 4294901760, %v6899_v46  ;;  %v5637_v13 = vpack.c.bf16 %v3440_v4, %v3433_v16  ;;  %v3489_v4 = vand.u32 4294901760, %v3488_v38  ;;  %v5703_v38 = vpack.c.bf16 %v3410_v33, %v3403_v29 }
 0x5e1   :  { %5600 = vmatprep.subr.bf16.mxu1 %v5865_v9 }
 0x5e2   :  { %5629 = vmatpush3.bf16.msra.mxu0 %v6904_v27  ;;  %v3453_v44 = vsub.f32 %v6899_v46, %v3452_v54 }
 0x5e3   :  { %5630 = vmatprep.subr.bf16.mxu0 %v5865_v9 }
 0x5e4   :  { %5602 = vmatpush3.bf16.msra.mxu1 %v6681_v14  ;;  %v3446_v14 = vsub.f32 %v6881_v19, %v3445_v51  ;;  %v3454_v1 = vand.u32 4294901760, %v3453_v44  ;;  %v3502_v44 = vsub.f32 %v6972_v5, %v3501_v34 }
 0x5e5   :  { %5051 = vmatmul.mubr.f32.vlgmr.msra.gmra.mrb[12].mxu0 %v3394_v0  ;;  %5603 = vmatprep.subr.bf16.mxu1 %v5865_v9  ;;  %v3468_v0 = vand.u32 4294901760, %v3467_v12 }
 0x5e6   :  { %5632 = vmatpush3.bf16.msra.mxu0 %v5631_v8  ;;  %5085 = vmatprep.mubr.msk.f32.mxu0 %vm5864_vm1, %v5863_v2  ;;  %v3474_v8 = vsub.f32 %v6930_v60, %v3473_v30 }
 0x5e7   :  { %5633 = vmatprep.subr.bf16.mxu0 %v5865_v9  ;;  %v5643_v15 = vpack.c.bf16 %v3468_v0, %v3461_v6  ;;  %v5655_v6 = vpack.c.bf16 %v6802_v35, %v6800_v17  ;;  %v5658_v0 = vpack.c.bf16 %v6827_v22, %v6825_v55  ;;  %v5709_v17 = vpack.c.bf16 %v3438_v63, %v3431_v45 }
 0x5e8   :  { %5605 = vmatpush3.bf16.msra.mxu1 %v6686_v56  ;;  %v3447_v56 = vand.u32 4294901760, %v3446_v14  ;;  %v3475_v26 = vand.u32 4294901760, %v3474_v8  ;;  %v3496_v14 = vand.u32 4294901760, %v3495_v52  ;;  %v5661_v8 = vpack.c.bf16 %v6866_v28, %v6852_v53 }
 0x5e9   :  { %v5706_v52 = vpack.c.bf16 %v3424_v23, %v3417_v11  ;;  %v5712_v35 = vpack.c.bf16 %v3452_v54, %v3445_v51  ;;  %v5718_v55 = vpack.c.bf16 %v3480_v43, %v3473_v30  ;;  %v5721_v22 = vpack.c.bf16 %v3494_v18, %v3487_v25 }
 0x5ea   :  { %5635 = vmatpush3.bf16.msra.mxu0 %v5634_v24  ;;  %v3508_v24 = vand.u32 4294901760, %v6983_v10  ;;  %v5646_v16 = vpack.c.bf16 %v3482_v36, %v3475_v26  ;;  %v5649_v12 = vpack.c.bf16 %v3496_v14, %v3489_v4  ;;  %v5673_v26 = vpack.c.bf16 %v6967_v21, %v6953_v40 }
 0x5eb   :  { %5016 = vmatmul.mubr.f32.vlgmr.msra.gmra.mrb[12].mxu1 %v6693_v59  ;;  %5636 = vmatprep.subr.bf16.mxu0 %v5865_v9  ;;  %v5640_v59 = vpack.c.bf16 %v3454_v1, %v3447_v56  ;;  %v5676_v36 = vpack.c.bf16 %v6983_v10, %v6972_v5 }
 0x5ec   :  { %v3509_v58 = vsub.f32 %v6983_v10, %v3508_v24  ;;  %v5724_v29 = vpack.c.bf16 %v3508_v24, %v3501_v34 }
 0x5ee   :  { %5638 = vmatpush3.bf16.msra.mxu0 %v5637_v13  ;;  %v3503_v13 = vand.u32 4294901760, %v3502_v44  ;;  %v3510_v56 = vand.u32 4294901760, %v3509_v58 }
 0x5ef   :  { %5639 = vmatprep.subr.bf16.mxu0 %v5865_v9 }
 0x5f0   :  { %v5652_v1 = vpack.c.bf16 %v3510_v56, %v3503_v13 }
 0x5f2   :  { %5641 = vmatpush3.bf16.msra.mxu0 %v5640_v59  ;;  %v5667_v59 = vpack.c.bf16 %v6913_v49, %v6910_v48 }
 0x5f3   :  { %5642 = vmatprep.subr.bf16.mxu0 %v5865_v9 }
 0x5f6   :  { %5644 = vmatpush3.bf16.msra.mxu0 %v5643_v15  ;;  %v5670_v15 = vpack.c.bf16 %v6936_v61, %v6930_v60 }
 0x5f7   :  { %5645 = vmatprep.subr.bf16.mxu0 %v5865_v9 }
 0x5fa   :  { %5647 = vmatpush3.bf16.msra.mxu0 %v5646_v16 }
 0x5fb   :  { %5648 = vmatprep.subr.bf16.mxu0 %v5865_v9 }
 0x5fe   :  { %5650 = vmatpush3.bf16.msra.mxu0 %v5649_v12 }
 0x5ff   :  { %5651 = vmatprep.subr.bf16.mxu0 %v5865_v9 }
 0x602   :  { %5653 = vmatpush3.bf16.msra.mxu0 %v5652_v1 }
 0x603   :  { %5654 = vmatprep.subr.bf16.mxu0 %v5865_v9 }
 0x605   :  { %5086 = vmatmul.mubr.f32.vlgmr.msra.gmra.mrb[12].mxu0 %v6797_v37 }
 0x606   :  { %5656 = vmatpush3.bf16.msra.mxu0 %v5655_v6  ;;  %5120 = vmatprep.mubr.msk.f32.mxu0 %vm5864_vm1, %v5863_v2 }
 0x607   :  { %5657 = vmatprep.subr.bf16.mxu0 %v5865_v9 }
 0x60a   :  { %5659 = vmatpush3.bf16.msra.mxu0 %v5658_v0 }
 0x60b   :  { %5660 = vmatprep.subr.bf16.mxu0 %v5865_v9 }
 0x60e   :  { %5662 = vmatpush3.bf16.msra.mxu0 %v5661_v8 }
 0x60f   :  { %5663 = vmatprep.subr.bf16.mxu0 %v5865_v9 }
 0x612   :  { %5665 = vmatpush3.bf16.msra.mxu0 %v5664_v32 }
 0x613   :  { %5666 = vmatprep.subr.bf16.mxu0 %v5865_v9 }
 0x616   :  { %5668 = vmatpush3.bf16.msra.mxu0 %v5667_v59 }
 0x617   :  { %5669 = vmatprep.subr.bf16.mxu0 %v5865_v9 }
 0x61a   :  { %5671 = vmatpush3.bf16.msra.mxu0 %v5670_v15 }
 0x61b   :  { %5672 = vmatprep.subr.bf16.mxu0 %v5865_v9 }
 0x61e   :  { %5674 = vmatpush3.bf16.msra.mxu0 %v5673_v26 }
 0x61f   :  { %5675 = vmatprep.subr.bf16.mxu0 %v5865_v9 }
 0x622   :  { %5677 = vmatpush3.bf16.msra.mxu0 %v5676_v36 }
 0x623   :  { %5678 = vmatprep.subr.bf16.mxu0 %v5865_v9 }
 0x625   :  { %5121 = vmatmul.mubr.f32.vlgmr.msra.gmra.mrb[12].mxu0 %v6822_v50  ;;  %v5715_v50 = vpack.c.bf16 %v3466_v31, %v3459_v42 }
 0x626   :  { %5680 = vmatpush3.bf16.msra.mxu0 %v6724_v62  ;;  %5155 = vmatprep.mubr.msk.f32.mxu0 %vm5864_vm1, %v5863_v2 }
 0x627   :  { %5681 = vmatprep.subr.bf16.mxu0 %v5865_v9 }
 0x62a   :  { %5683 = vmatpush3.bf16.msra.mxu0 %v6738_v7 }
 0x62b   :  { %5684 = vmatprep.subr.bf16.mxu0 %v5865_v9 }
 0x62e   :  { %5686 = vmatpush3.bf16.msra.mxu0 %v6756_v57 }
 0x62f   :  { %5687 = vmatprep.subr.bf16.mxu0 %v5865_v9 }
 0x632   :  { %5689 = vmatpush3.bf16.msra.mxu0 %v6779_v20 }
 0x633   :  { %5690 = vmatprep.subr.bf16.mxu0 %v5865_v9 }
 0x636   :  { %5692 = vmatpush3.bf16.msra.mxu0 %v6806_v41 }
 0x637   :  { %5693 = vmatprep.subr.bf16.mxu0 %v5865_v9 }
 0x63a   :  { %5695 = vmatpush3.bf16.msra.mxu0 %v6837_v39 }
 0x63b   :  { %5696 = vmatprep.subr.bf16.mxu0 %v5865_v9 }
 0x63e   :  { %5698 = vmatpush3.bf16.msra.mxu0 %v6873_v47 }
 0x63f   :  { %5699 = vmatprep.subr.bf16.mxu0 %v5865_v9 }
 0x642   :  { %5701 = vmatpush3.bf16.msra.mxu0 %v6904_v27 }
 0x643   :  { %5702 = vmatprep.subr.bf16.mxu0 %v5865_v9 }
 0x645   :  { %5156 = vmatmul.mubr.f32.vlgmr.msra.gmra.mrb[12].mxu0 %v3392_v3 }
 0x646   :  { %5704 = vmatpush3.bf16.msra.mxu0 %v5703_v38  ;;  %5190 = vmatprep.mubr.msk.f32.mxu0 %vm5864_vm1, %v5863_v2 }
 0x647   :  { %5705 = vmatprep.subr.bf16.mxu0 %v5865_v9 }
 0x64a   :  { %5707 = vmatpush3.bf16.msra.mxu0 %v5706_v52 }
 0x64b   :  { %5708 = vmatprep.subr.bf16.mxu0 %v5865_v9 }
 0x64e   :  { %5710 = vmatpush3.bf16.msra.mxu0 %v5709_v17 }
 0x64f   :  { %5711 = vmatprep.subr.bf16.mxu0 %v5865_v9 }
 0x652   :  { %5713 = vmatpush3.bf16.msra.mxu0 %v5712_v35 }
 0x653   :  { %5714 = vmatprep.subr.bf16.mxu0 %v5865_v9 }
 0x656   :  { %5716 = vmatpush3.bf16.msra.mxu0 %v5715_v50 }
 0x657   :  { %5717 = vmatprep.subr.bf16.mxu0 %v5865_v9 }
 0x65a   :  { %5719 = vmatpush3.bf16.msra.mxu0 %v5718_v55 }
 0x65b   :  { %5720 = vmatprep.subr.bf16.mxu0 %v5865_v9 }
 0x65e   :  { %5722 = vmatpush3.bf16.msra.mxu0 %v5721_v22 }
 0x65f   :  { %5723 = vmatprep.subr.bf16.mxu0 %v5865_v9 }
 0x662   :  { %5725 = vmatpush3.bf16.msra.mxu0 %v5724_v29 }
 0x663   :  { %5726 = vmatprep.subr.bf16.mxu0 %v5865_v9 }
 0x665   :  { %5191 = vmatmul.mubr.f32.vlgmr.msra.gmra.mrb[12].mxu0 %v6797_v37 }
 0x666   :  { %5728 = vmatpush3.bf16.msra.mxu0 %v6724_v62  ;;  %5225 = vmatprep.mubr.msk.f32.mxu0 %vm5864_vm1, %v5863_v2 }
 0x667   :  { %5729 = vmatprep.subr.bf16.mxu0 %v5865_v9 }
 0x66a   :  { %5731 = vmatpush3.bf16.msra.mxu0 %v6738_v7 }
 0x66b   :  { %5732 = vmatprep.subr.bf16.mxu0 %v5865_v9 }
 0x66e   :  { %5734 = vmatpush3.bf16.msra.mxu0 %v6756_v57 }
 0x66f   :  { %5735 = vmatprep.subr.bf16.mxu0 %v5865_v9 }
 0x672   :  { %5737 = vmatpush3.bf16.msra.mxu0 %v6779_v20 }
 0x673   :  { %5738 = vmatprep.subr.bf16.mxu0 %v5865_v9 }
 0x676   :  { %5740 = vmatpush3.bf16.msra.mxu0 %v6806_v41 }
 0x677   :  { %5741 = vmatprep.subr.bf16.mxu0 %v5865_v9 }
 0x67a   :  { %5743 = vmatpush3.bf16.msra.mxu0 %v6837_v39 }
 0x67b   :  { %5744 = vmatprep.subr.bf16.mxu0 %v5865_v9 }
 0x67e   :  { %5746 = vmatpush3.bf16.msra.mxu0 %v6873_v47 }
 0x67f   :  { %5747 = vmatprep.subr.bf16.mxu0 %v5865_v9 }
 0x682   :  { %5749 = vmatpush3.bf16.msra.mxu0 %v6904_v27  ;;  %v5814_v27 = vld [vmem:[%s7157_s11] sm:$0x3] }
 0x685   :  { %5226 = vmatmul.mubr.f32.vlgmr.msra.gmra.mrb[12].mxu0 %v6797_v37  ;;  %v3979_v37 = vld [vmem:[%s7147_s1] ss:$0 sm:$0xff] }
 0x688   :  { %v3024_v2 = vpop.f32.mrb[8].mxu0 }
 0x689   :  { %v4960_v62 = vpop.f32.mrb[9].mxu0 }
 0x68e   :  { %v2825_v7 = vpop.f32.mrb[6].mxu1 }
 0x68f   :  { %v4922_v57 = vpop.f32.mrb[7].mxu1 }
 0x698   :  { %v3200_v20 = vpop.f32.mrb[10].mxu0 }
 0x699   :  { %v4998_v41 = vpop.f32.mrb[11].mxu0 }
 0x69e   :  { %v2936_v33 = vpop.f32.mrb[8].mxu1 }
 0x69f   :  { %v2937_v53 = vadd.f32 %v2936_v33, %v2825_v7  ;;  %v4941_v3 = vpop.f32.mrb[9].mxu1 }
 0x6a1   :  { %v3025_v39 = vadd.f32 %v3024_v2, %v2937_v53 }
 0x6ae   :  { %v3105_v11 = vpop.f32.mrb[10].mxu1 }
 0x6af   :  { %v3106_v23 = vadd.f32 %v3105_v11, %v3025_v39  ;;  %v4979_v28 = vpop.f32.mrb[11].mxu1 }
 0x6b1   :  { %v3201_v47 = vadd.f32 %v3200_v20, %v3106_v23 }
 0x6be   :  { %v3279_v19 = vpop.f32.mrb[12].mxu1 }
 0x6bf   :  { %v3280_v9 = vadd.f32 %v3279_v19, %v3201_v47  ;;  %v5017_v46 = vpop.f32.mrb[13].mxu1 }
 0x6c1   :  { %v3283_v45 = vadd.f32 %v5814_v27, %v3280_v9 }
 0x6c3   :  { %v3290_v63 = vadd.f32 %v3979_v37, %v3283_v45 }
 0x6c5   :  { %3292 = vst.msk [vmem:[#allocation2] sm:$0x3] %vm3291_vm4, %v3290_v63 }
 0x6c6   :  { %5826 = shalt.err (!%p5823_p4)
}
 0x6c7   :  { %s5827_s30 = scalar_lea.hbm %s7158_s12, 32 }
 0x6c8   :  { %p5828_p5 = scmp.ne.s32.totalorder %s7158_s12, %s5827_s30  ;;  %p5831_p6 = scmp.lt.u32.totalorder %s5827_s30, %s7158_s12 }
 0x6ca   :  { %p5833_p7 = pnand %p5831_p6, %p5828_p5 }
 0x6cc   :  { %5836 = shalt.err (!%p5833_p7)
}
 0x6cd   :  { %3960 = dma.vmem_to_hbm [thread:$0]  %s3958_s28, 32, %s7158_s12, [#allocation3]  }
 0x6ce   :  { %s5867_s17 = smov [#allocation4]  }
 0x6cf   :  { %s3967_s18 = sshll.u32 %s5867_s17, 4  ;;  %s3968_s18 = int_to_ptr.vmem [resolvable:$true] %s3967_s18 }
 0x6d0   :  { %s5837_s7 = scalar_lea.vmem %s3968_s18, 32  ;;  %p5842_p9 = scmp.lt.s32.totalorder %s3968_s18, %s3968_s18 }
 0x6d1   :  { %p5838_p8 = scmp.ne.s32.totalorder %s3968_s18, %s5837_s7  ;;  %p5843_p10 = scmp.lt.s32.totalorder %s5837_s7, %s5837_s7 }
 0x6d3   :  { %p5844_p11 = por %p5843_p10, %p5842_p9 }
 0x6d5   :  { %p5845_p12 = pnand %p5844_p11, %p5838_p8 }
 0x758   :  { %v3946_v48 = vpop.f32.mrb[12].mxu0 }
 0x759   :  { %3950 = vst [vmem:[#allocation4] sm:$0x3] %v3946_v48  ;;  %v5227_v49 = vpop.f32.mrb[13].mxu0 }
 0x75a   :  { %5848 = shalt.err (!%p5845_p12)
}
 0x75b   :  { %s5849_s9 = scalar_lea.hbm %s7159_s13, 32 }
 0x75c   :  { %p5850_p13 = scmp.ne.s32.totalorder %s7159_s13, %s5849_s9  ;;  %p5853_p0 = scmp.lt.u32.totalorder %s5849_s9, %s7159_s13 }
 0x75e   :  { %p5855_p1 = pnand %p5853_p0, %p5850_p13 }
 0x760   :  { %5858 = shalt.err (!%p5855_p1)
}
 0x761   :  { %3970 = dma.vmem_to_hbm [thread:$0]  %s3968_s18, 32, %s7159_s13, [#allocation5]  }
 0x762   :  { %5859 = dma.done.wait [#allocation3], 32  }
 0x763   :  { %5860 = vsyncadd [#allocation3], 4294967264 }
 0x764   :  { %5861 = dma.done.wait [#allocation5], 32  }
 0x765   :  { %5862 = vsyncadd [#allocation5], 4294967264 }
 0x766   :  { %3977 = vsyncpa [#allocation3], 1 }
 0x767   :  { %3978 = vsyncpa [#allocation5], 1 }

</bundles_post_ra>
